<compile_context>
chip_gen: v6e
topology: v6e:2x2x1
jax: 0.10.0
libtpu: 0.0.40
codegen_flags: <defaults>
</compile_context>

<pallas_src>
import functools

import jax
import jax.numpy as jnp
import numpy as np
from jax.experimental import pallas as pl
from jax.experimental.pallas import tpu as pltpu

_D1_PAD = 128   # dense-1 width padded to a full lane tile
_OUT_PAD = 128  # dense-2 width padded to a full lane tile


def _elu_f32(x):
    # ELU(alpha=1) in f32; exp only evaluated on the non-positive branch.
    return jnp.where(x > 0, x, jnp.exp(jnp.minimum(x, 0.0)) - 1.0)


# ----------------------------------------------------------------------------
# Fused forward kernel: one grid step == one tile of `nt` samples.
#   cols_ref : (nt*KK, P)        bf16  stacked im2col patches (sample-major rows)
#   wblk_ref : (C_out*nt, nt*KK) bf16  block-diag conv weight: [c*nt+n, m*KK+k] = wc[c,k]*d(n,m)
#   brows_ref: (C_out*nt, 1)     f32   conv bias replicated per sample row
#   w1_ref   : (C_out, P, 128)   bf16  dense-1 weight, NCHW flatten folded, d1 padded
#   b1_ref   : (1, 128)          f32   (zeros beyond d1)
#   w2_ref   : (128, 128)        f32   dense-2 weight (zero-padded rows/cols)
#   b2_ref   : (1, 128)          f32   (zeros beyond d2)
#   o_ref    : (nt, 128)         f32
#   act_ref  : (C_out*nt, P)     bf16  VMEM scratch for the conv activation
# ----------------------------------------------------------------------------
def _fused_forward_kernel(cols_ref, wblk_ref, brows_ref, w1_ref, b1_ref,
                          w2_ref, b2_ref, o_ref, act_ref):
    # --- conv_2d(16) + bias + ELU: ONE 2D MXU matmul for the whole tile ------
    conv = jnp.dot(wblk_ref[...], cols_ref[...],
                   preferred_element_type=jnp.float32)           # (C_out*nt, P)
    conv = _elu_f32(conv + brows_ref[...])                       # f32 epilogue
    act_ref[...] = conv.astype(jnp.bfloat16)                     # bf16 feed to MXU

    c_out = w1_ref.shape[0]
    nt = o_ref.shape[0]

    # --- Flatten + dense(d1): 16 independent (nt,P)@(P,128) matmuls ----------
    # (per-channel contiguous row-slices of the activation scratch; flatten is
    #  folded into w1[c]).  Balanced-tree reduce instead of a serial chain.
    parts = [
        jnp.dot(act_ref[c * nt:(c + 1) * nt, :], w1_ref[c],
                preferred_element_type=jnp.float32)              # (nt, 128)
        for c in range(c_out)
    ]
    while len(parts) > 1:
        parts = [parts[i] + parts[i + 1] if i + 1 < len(parts) else parts[i]
                 for i in range(0, len(parts), 2)]
    h1 = _elu_f32(parts[0] + b1_ref[...])                        # (nt, 128)

    # --- Dropout(0.2): identity in eval mode ---------------------------------
    # TODO(synk): training-mode dropout (pltpu.prng_seed / prng_random_bits mask)
    # not emitted; eval semantics used.

    # --- dense(d2): lane-dense padded (nt,128)@(128,128) ---------------------
    out = jnp.dot(h1, w2_ref[...], preferred_element_type=jnp.float32)
    o_ref[...] = (out + b2_ref[...]).astype(o_ref.dtype)


# ----------------------------------------------------------------------------
# One-time parameter preparation (hoisted out of the jitted hot path)
# ----------------------------------------------------------------------------
def prepare_params(params):
    conv_w = jnp.asarray(params["conv_w"], jnp.float32)    # (C_out, C_in, kh, kw)
    c_out, c_in, kh, kw = conv_w.shape
    d1_w = jnp.asarray(params["d1_w"], jnp.float32)        # (C_out*P, d1), NCHW row order
    d1 = d1_w.shape[1]
    p = d1_w.shape[0] // c_out
    d2_w = jnp.asarray(params["d2_w"], jnp.float32)        # (d1, d2)
    d2 = d2_w.shape[1]

    # dense-1 weight with NCHW flatten folded in; d1 zero-padded to 128 lanes.
    w1 = jnp.zeros((c_out, p, _D1_PAD), jnp.float32)
    w1 = w1.at[:, :, :d1].set(d1_w.reshape(c_out, p, d1))
    # dense-2 padded to (128, 128); padded rows/cols are zero.
    w2 = jnp.zeros((_D1_PAD, _OUT_PAD), jnp.float32).at[:d1, :d2].set(d2_w)

    prep = {
        "wc": conv_w.reshape(c_out, c_in * kh * kw).astype(jnp.bfloat16),  # k = ci*kh*kw+i*kw+j
        "bc": jnp.asarray(params["conv_b"], jnp.float32).reshape(c_out, 1),
        "w1": w1.astype(jnp.bfloat16),
        "b1": jnp.zeros((1, _D1_PAD), jnp.float32).at[:, :d1].set(
            jnp.asarray(params["d1_b"], jnp.float32)),
        "w2": w2,
        "b2": jnp.zeros((1, _OUT_PAD), jnp.float32).at[:, :d2].set(
            jnp.asarray(params["d2_b"], jnp.float32)),
    }
    meta = dict(kh=int(kh), kw=int(kw), n_out=int(d2))
    return prep, meta


def _im2col_T_nchw(x, kh, kw):
    """(N, C, H, W) -> (N, C*kh*kw, Ho*Wo); k = ci*kh*kw + i*kw + j, p = ho*Wo + wo."""
    n, c, h, w = x.shape
    ho, wo = h - kh + 1, w - kw + 1
    taps = [x[:, :, i:i + ho, j:j + wo] for i in range(kh) for j in range(kw)]
    cols = jnp.stack(taps, axis=2)                          # (N, C, kh*kw, Ho, Wo)
    return cols.reshape(n, c * kh * kw, ho * wo)


# ----------------------------------------------------------------------------
# Fused forward wrapper
# ----------------------------------------------------------------------------
@functools.partial(jax.jit, static_argnames=("kh", "kw", "n_out"))
def build_layer_forward(x, prep, *, kh, kw, n_out):
    n = x.shape[0]
    c_out, kk = prep["wc"].shape
    p = prep["w1"].shape[1]

    # Batch tiling: whole (small) batch in ONE grid step; >8 samples -> tiles
    # of 8 (f32 sublane multiple) so per-step overhead is amortised and every
    # matmul sees M = nt.
    nt = n if n <= 8 else 8
    n_pad = ((n + nt - 1) // nt) * nt
    ntiles = n_pad // nt

    # TODO(synk): im2col stays as cheap XLA wrapper glue (emitted in bf16);
    # building patches in-kernel needs a sublane->lane merge Mosaic may not lower.
    cols = _im2col_T_nchw(x.astype(jnp.float32), kh, kw).astype(jnp.bfloat16)
    if n_pad != n:
        cols = jnp.pad(cols, ((0, n_pad - n), (0, 0), (0, 0)))
    cols_stack = cols.reshape(n_pad * kk, p)                # rows sample-major

    # Block-diagonal conv weight: row (c*nt + n), col (m*kk + k) = wc[c,k]*d(n,m)
    eye = jnp.eye(nt, dtype=jnp.bfloat16)
    wblk = (prep["wc"][:, None, None, :] * eye[None, :, :, None]
            ).reshape(c_out * nt, nt * kk)
    brows = jnp.repeat(prep["bc"], nt, axis=0)              # (c_out*nt, 1)

    flops = 2 * ntiles * ((c_out * nt) * (nt * kk) * p
                          + c_out * nt * p * _D1_PAD
                          + nt * _D1_PAD * _OUT_PAD)
    transcendentals = ntiles * (c_out * nt * p + nt * _D1_PAD)
    bytes_accessed = int(cols_stack.size * 2 + wblk.size * 2 + brows.size * 4
                         + prep["w1"].size * 2 + prep["b1"].size * 4
                         + prep["w2"].size * 4 + prep["b2"].size * 4
                         + n_pad * _OUT_PAD * 4)

    out = pl.pallas_call(
        _fused_forward_kernel,
        out_shape=jax.ShapeDtypeStruct((n_pad, _OUT_PAD), jnp.float32),
        grid=(ntiles,),
        in_specs=[
            pl.BlockSpec((nt * kk, p), lambda t: (t, 0)),            # patches (per tile)
            pl.BlockSpec((c_out * nt, nt * kk), lambda t: (0, 0)),   # block-diag conv w
            pl.BlockSpec((c_out * nt, 1), lambda t: (0, 0)),         # conv bias rows
            pl.BlockSpec((c_out, p, _D1_PAD), lambda t: (0, 0, 0)),  # w1 (bf16, resident)
            pl.BlockSpec((1, _D1_PAD), lambda t: (0, 0)),            # b1 (padded)
            pl.BlockSpec((_D1_PAD, _OUT_PAD), lambda t: (0, 0)),     # w2 (padded)
            pl.BlockSpec((1, _OUT_PAD), lambda t: (0, 0)),           # b2 (padded)
        ],
        out_specs=pl.BlockSpec((nt, _OUT_PAD), lambda t: (t, 0)),
        scratch_shapes=[pltpu.VMEM((c_out * nt, p), jnp.bfloat16)],
        compiler_params=pltpu.CompilerParams(
            dimension_semantics=("parallel",)),
        cost_estimate=pl.CostEstimate(flops=flops,
                                      transcendentals=transcendentals,
                                      bytes_accessed=bytes_accessed),
    )(cols_stack, wblk, brows, prep["w1"], prep["b1"], prep["w2"], prep["b2"])
    return out[:n, :n_out]


# ----------------------------------------------------------------------------
# Pure-JAX reference (correctness check) and param init
# ----------------------------------------------------------------------------
def reference_forward(x, params):
    conv = jax.lax.conv_general_dilated(
        x, params["conv_w"], window_strides=(1, 1), padding="VALID",
        dimension_numbers=("NCHW", "OIHW", "NCHW"))
    conv = conv + params["conv_b"].reshape(1, -1, 1, 1)
    conv = jnp.where(conv > 0, conv, jnp.exp(jnp.minimum(conv, 0.0)) - 1.0)
    flat = conv.reshape(x.shape[0], -1)                     # PyTorch NCHW flatten
    h1 = flat @ params["d1_w"] + params["d1_b"]
    h1 = jnp.where(h1 > 0, h1, jnp.exp(jnp.minimum(h1, 0.0)) - 1.0)
    return h1 @ params["d2_w"] + params["d2_b"]             # Dropout = identity (eval)


def init_params(key, c_in=4, h=16, w=16, c_out=16, k=3, d1=32, d2=16):
    ho, wo = h - k + 1, w - k + 1
    flat = c_out * ho * wo
    ks = jax.random.split(key, 6)
    return {
        "conv_w": 0.1 * jax.random.normal(ks[0], (c_out, c_in, k, k), jnp.float32),
        "conv_b": 0.1 * jax.random.normal(ks[1], (c_out,), jnp.float32),
        "d1_w":   0.05 * jax.random.normal(ks[2], (flat, d1), jnp.float32),
        "d1_b":   0.05 * jax.random.normal(ks[3], (d1,), jnp.float32),
        "d2_w":   0.1 * jax.random.normal(ks[4], (d1, d2), jnp.float32),
        "d2_b":   0.1 * jax.random.normal(ks[5], (d2,), jnp.float32),
    }


if __name__ == "__main__":
    key = jax.random.PRNGKey(0)
    k_x, k_p = jax.random.split(key)

    # Input: NCHW, batch=2, channels=4, spatial=16x16
    x = jax.random.normal(k_x, (2, 4, 16, 16), jnp.float32)
    params = init_params(k_p)
    prep, meta = prepare_params(params)          # one-time weight layout prep

    out = build_layer_forward(x, prep, kh=meta["kh"], kw=meta["kw"],
                              n_out=meta["n_out"])
    out = jax.block_until_ready(out)

    ref = jax.block_until_ready(reference_forward(x, params))
    assert out.shape == (2, 16), out.shape
    assert bool(jnp.all(jnp.isfinite(out)))
    # bf16 patches / conv weights / conv activations / w1 with f32 accumulation:
    # small, bounded mismatch (documented accuracy budget).
    np.testing.assert_allclose(np.asarray(out), np.asarray(ref),
                               rtol=0.1, atol=0.1)
    print("KERNEL_OK")
</pallas_src>

<mosaic_0001>
module attributes {stable_mosaic.version = 11 : i64} {
  func.func @_fused_forward_kernel(%arg0: i32, %arg1: memref<72x196xbf16, #tpu.memory_space<vmem>>, %arg2: memref<32x72xbf16, #tpu.memory_space<vmem>>, %arg3: memref<32x1xf32, #tpu.memory_space<vmem>>, %arg4: memref<16x196x128xbf16, #tpu.memory_space<vmem>>, %arg5: memref<1x128xf32, #tpu.memory_space<vmem>>, %arg6: memref<128x128xf32, #tpu.memory_space<vmem>>, %arg7: memref<1x128xf32, #tpu.memory_space<vmem>>, %arg8: memref<2x128xf32, #tpu.memory_space<vmem>>, %arg9: memref<32x196xbf16, #tpu.memory_space<vmem>>) attributes {dimension_semantics = [#tpu.dimension_semantics<parallel>], iteration_bounds = array<i64: 1>, scalar_prefetch = 0 : i64, scratch_operands = 1 : i64, tpu.core_type = #tpu.core_type<tc>, window_params = [{transform_indices = @transform_0, window_bounds = array<i64: 72, 196>}, {pipeline_mode = #tpu.pipeline_mode<synchronous>, transform_indices = @transform_1, window_bounds = array<i64: 32, 72>}, {pipeline_mode = #tpu.pipeline_mode<synchronous>, transform_indices = @transform_2, window_bounds = array<i64: 32, 1>}, {pipeline_mode = #tpu.pipeline_mode<synchronous>, transform_indices = @transform_3, window_bounds = array<i64: 16, 196, 128>}, {pipeline_mode = #tpu.pipeline_mode<synchronous>, transform_indices = @transform_4, window_bounds = array<i64: 1, 128>}, {pipeline_mode = #tpu.pipeline_mode<synchronous>, transform_indices = @transform_5, window_bounds = array<i64: 128, 128>}, {pipeline_mode = #tpu.pipeline_mode<synchronous>, transform_indices = @transform_6, window_bounds = array<i64: 1, 128>}, {transform_indices = @transform_7, window_bounds = array<i64: 2, 128>}]} {
    %c0 = arith.constant 0 : index
    %c0_0 = arith.constant 0 : index
    %0 = vector.load %arg2[%c0, %c0_0] : memref<32x72xbf16, #tpu.memory_space<vmem>>, vector<32x72xbf16>
    %c0_1 = arith.constant 0 : index
    %c0_2 = arith.constant 0 : index
    %1 = vector.load %arg1[%c0_1, %c0_2] : memref<72x196xbf16, #tpu.memory_space<vmem>>, vector<72x196xbf16>
    %cst = arith.constant dense<0.000000e+00> : vector<32x196xf32>
    %2 = tpu.matmul %0, %1, %cst {dimension_numbers = #tpu.dot_dimension_numbers<[1], [0], [0], [1], [0, 0, 1, 1], [], []>} : vector<32x72xbf16>, vector<72x196xbf16>, vector<32x196xf32> -> vector<32x196xf32>
    %c0_3 = arith.constant 0 : index
    %c0_4 = arith.constant 0 : index
    %3 = vector.load %arg3[%c0_3, %c0_4] : memref<32x1xf32, #tpu.memory_space<vmem>>, vector<32x1xf32>
    %4 = vector.broadcast %3 : vector<32x1xf32> to vector<32x196xf32>
    %5 = arith.addf %2, %4 : vector<32x196xf32>
    %cst_5 = arith.constant 0.000000e+00 : f32
    %6 = vector.broadcast %cst_5 : f32 to vector<32x196xf32>
    %7 = arith.cmpf ogt, %5, %6 : vector<32x196xf32>
    %cst_6 = arith.constant 0.000000e+00 : f32
    %8 = vector.broadcast %cst_6 : f32 to vector<32x196xf32>
    %9 = arith.minimumf %5, %8 : vector<32x196xf32>
    %10 = math.exp %9 : vector<32x196xf32>
    %cst_7 = arith.constant 1.000000e+00 : f32
    %11 = vector.broadcast %cst_7 : f32 to vector<32x196xf32>
    %12 = arith.subf %10, %11 : vector<32x196xf32>
    %13 = arith.select %7, %5, %12 : vector<32x196xi1>, vector<32x196xf32>
    %14 = arith.truncf %13 : vector<32x196xf32> to vector<32x196xbf16>
    %c0_8 = arith.constant 0 : index
    %c0_9 = arith.constant 0 : index
    %15 = vector.load %arg9[%c0_8, %c0_9] : memref<32x196xbf16, #tpu.memory_space<vmem>>, vector<32x196xbf16>
    tpu.vector_store %arg9[%c0_8, %c0_9], %14 {strides = array<i32>} : memref<32x196xbf16, #tpu.memory_space<vmem>>, vector<32x196xbf16>,
    %c0_10 = arith.constant 0 : index
    %c0_11 = arith.constant 0 : index
    %16 = vector.load %arg9[%c0_10, %c0_11] : memref<32x196xbf16, #tpu.memory_space<vmem>>, vector<2x196xbf16>
    %c0_12 = arith.constant 0 : index
    %c0_13 = arith.constant 0 : index
    %c0_14 = arith.constant 0 : index
    %17 = vector.load %arg4[%c0_12, %c0_13, %c0_14] : memref<16x196x128xbf16, #tpu.memory_space<vmem>>, vector<1x196x128xbf16>
    %18 = vector.shape_cast %17 : vector<1x196x128xbf16> to vector<196x128xbf16>
    %cst_15 = arith.constant dense<0.000000e+00> : vector<2x128xf32>
    %19 = tpu.matmul %16, %18, %cst_15 {dimension_numbers = #tpu.dot_dimension_numbers<[1], [0], [0], [1], [0, 0, 1, 1], [], []>} : vector<2x196xbf16>, vector<196x128xbf16>, vector<2x128xf32> -> vector<2x128xf32>
    %c2 = arith.constant 2 : index
    %c0_16 = arith.constant 0 : index
    %20 = vector.load %arg9[%c2, %c0_16] : memref<32x196xbf16, #tpu.memory_space<vmem>>, vector<2x196xbf16>
    %c1 = arith.constant 1 : index
    %c0_17 = arith.constant 0 : index
    %c0_18 = arith.constant 0 : index
    %21 = vector.load %arg4[%c1, %c0_17, %c0_18] : memref<16x196x128xbf16, #tpu.memory_space<vmem>>, vector<1x196x128xbf16>
    %22 = vector.shape_cast %21 : vector<1x196x128xbf16> to vector<196x128xbf16>
    %cst_19 = arith.constant dense<0.000000e+00> : vector<2x128xf32>
    %23 = tpu.matmul %20, %22, %cst_19 {dimension_numbers = #tpu.dot_dimension_numbers<[1], [0], [0], [1], [0, 0, 1, 1], [], []>} : vector<2x196xbf16>, vector<196x128xbf16>, vector<2x128xf32> -> vector<2x128xf32>
    %c4 = arith.constant 4 : index
    %c0_20 = arith.constant 0 : index
    %24 = vector.load %arg9[%c4, %c0_20] : memref<32x196xbf16, #tpu.memory_space<vmem>>, vector<2x196xbf16>
    %c2_21 = arith.constant 2 : index
    %c0_22 = arith.constant 0 : index
    %c0_23 = arith.constant 0 : index
    %25 = vector.load %arg4[%c2_21, %c0_22, %c0_23] : memref<16x196x128xbf16, #tpu.memory_space<vmem>>, vector<1x196x128xbf16>
    %26 = vector.shape_cast %25 : vector<1x196x128xbf16> to vector<196x128xbf16>
    %cst_24 = arith.constant dense<0.000000e+00> : vector<2x128xf32>
    %27 = tpu.matmul %24, %26, %cst_24 {dimension_numbers = #tpu.dot_dimension_numbers<[1], [0], [0], [1], [0, 0, 1, 1], [], []>} : vector<2x196xbf16>, vector<196x128xbf16>, vector<2x128xf32> -> vector<2x128xf32>
    %c6 = arith.constant 6 : index
    %c0_25 = arith.constant 0 : index
    %28 = vector.load %arg9[%c6, %c0_25] : memref<32x196xbf16, #tpu.memory_space<vmem>>, vector<2x196xbf16>
    %c3 = arith.constant 3 : index
    %c0_26 = arith.constant 0 : index
    %c0_27 = arith.constant 0 : index
    %29 = vector.load %arg4[%c3, %c0_26, %c0_27] : memref<16x196x128xbf16, #tpu.memory_space<vmem>>, vector<1x196x128xbf16>
    %30 = vector.shape_cast %29 : vector<1x196x128xbf16> to vector<196x128xbf16>
    %cst_28 = arith.constant dense<0.000000e+00> : vector<2x128xf32>
    %31 = tpu.matmul %28, %30, %cst_28 {dimension_numbers = #tpu.dot_dimension_numbers<[1], [0], [0], [1], [0, 0, 1, 1], [], []>} : vector<2x196xbf16>, vector<196x128xbf16>, vector<2x128xf32> -> vector<2x128xf32>
    %c8 = arith.constant 8 : index
    %c0_29 = arith.constant 0 : index
    %32 = vector.load %arg9[%c8, %c0_29] : memref<32x196xbf16, #tpu.memory_space<vmem>>, vector<2x196xbf16>
    %c4_30 = arith.constant 4 : index
    %c0_31 = arith.constant 0 : index
    %c0_32 = arith.constant 0 : index
    %33 = vector.load %arg4[%c4_30, %c0_31, %c0_32] : memref<16x196x128xbf16, #tpu.memory_space<vmem>>, vector<1x196x128xbf16>
    %34 = vector.shape_cast %33 : vector<1x196x128xbf16> to vector<196x128xbf16>
    %cst_33 = arith.constant dense<0.000000e+00> : vector<2x128xf32>
    %35 = tpu.matmul %32, %34, %cst_33 {dimension_numbers = #tpu.dot_dimension_numbers<[1], [0], [0], [1], [0, 0, 1, 1], [], []>} : vector<2x196xbf16>, vector<196x128xbf16>, vector<2x128xf32> -> vector<2x128xf32>
    %c10 = arith.constant 10 : index
    %c0_34 = arith.constant 0 : index
    %36 = vector.load %arg9[%c10, %c0_34] : memref<32x196xbf16, #tpu.memory_space<vmem>>, vector<2x196xbf16>
    %c5 = arith.constant 5 : index
    %c0_35 = arith.constant 0 : index
    %c0_36 = arith.constant 0 : index
    %37 = vector.load %arg4[%c5, %c0_35, %c0_36] : memref<16x196x128xbf16, #tpu.memory_space<vmem>>, vector<1x196x128xbf16>
    %38 = vector.shape_cast %37 : vector<1x196x128xbf16> to vector<196x128xbf16>
    %cst_37 = arith.constant dense<0.000000e+00> : vector<2x128xf32>
    %39 = tpu.matmul %36, %38, %cst_37 {dimension_numbers = #tpu.dot_dimension_numbers<[1], [0], [0], [1], [0, 0, 1, 1], [], []>} : vector<2x196xbf16>, vector<196x128xbf16>, vector<2x128xf32> -> vector<2x128xf32>
    %c12 = arith.constant 12 : index
    %c0_38 = arith.constant 0 : index
    %40 = vector.load %arg9[%c12, %c0_38] : memref<32x196xbf16, #tpu.memory_space<vmem>>, vector<2x196xbf16>
    %c6_39 = arith.constant 6 : index
    %c0_40 = arith.constant 0 : index
    %c0_41 = arith.constant 0 : index
    %41 = vector.load %arg4[%c6_39, %c0_40, %c0_41] : memref<16x196x128xbf16, #tpu.memory_space<vmem>>, vector<1x196x128xbf16>
    %42 = vector.shape_cast %41 : vector<1x196x128xbf16> to vector<196x128xbf16>
    %cst_42 = arith.constant dense<0.000000e+00> : vector<2x128xf32>
    %43 = tpu.matmul %40, %42, %cst_42 {dimension_numbers = #tpu.dot_dimension_numbers<[1], [0], [0], [1], [0, 0, 1, 1], [], []>} : vector<2x196xbf16>, vector<196x128xbf16>, vector<2x128xf32> -> vector<2x128xf32>
    %c14 = arith.constant 14 : index
    %c0_43 = arith.constant 0 : index
    %44 = vector.load %arg9[%c14, %c0_43] : memref<32x196xbf16, #tpu.memory_space<vmem>>, vector<2x196xbf16>
    %c7 = arith.constant 7 : index
    %c0_44 = arith.constant 0 : index
    %c0_45 = arith.constant 0 : index
    %45 = vector.load %arg4[%c7, %c0_44, %c0_45] : memref<16x196x128xbf16, #tpu.memory_space<vmem>>, vector<1x196x128xbf16>
    %46 = vector.shape_cast %45 : vector<1x196x128xbf16> to vector<196x128xbf16>
    %cst_46 = arith.constant dense<0.000000e+00> : vector<2x128xf32>
    %47 = tpu.matmul %44, %46, %cst_46 {dimension_numbers = #tpu.dot_dimension_numbers<[1], [0], [0], [1], [0, 0, 1, 1], [], []>} : vector<2x196xbf16>, vector<196x128xbf16>, vector<2x128xf32> -> vector<2x128xf32>
    %c16 = arith.constant 16 : index
    %c0_47 = arith.constant 0 : index
    %48 = vector.load %arg9[%c16, %c0_47] : memref<32x196xbf16, #tpu.memory_space<vmem>>, vector<2x196xbf16>
    %c8_48 = arith.constant 8 : index
    %c0_49 = arith.constant 0 : index
    %c0_50 = arith.constant 0 : index
    %49 = vector.load %arg4[%c8_48, %c0_49, %c0_50] : memref<16x196x128xbf16, #tpu.memory_space<vmem>>, vector<1x196x128xbf16>
    %50 = vector.shape_cast %49 : vector<1x196x128xbf16> to vector<196x128xbf16>
    %cst_51 = arith.constant dense<0.000000e+00> : vector<2x128xf32>
    %51 = tpu.matmul %48, %50, %cst_51 {dimension_numbers = #tpu.dot_dimension_numbers<[1], [0], [0], [1], [0, 0, 1, 1], [], []>} : vector<2x196xbf16>, vector<196x128xbf16>, vector<2x128xf32> -> vector<2x128xf32>
    %c18 = arith.constant 18 : index
    %c0_52 = arith.constant 0 : index
    %52 = vector.load %arg9[%c18, %c0_52] : memref<32x196xbf16, #tpu.memory_space<vmem>>, vector<2x196xbf16>
    %c9 = arith.constant 9 : index
    %c0_53 = arith.constant 0 : index
    %c0_54 = arith.constant 0 : index
    %53 = vector.load %arg4[%c9, %c0_53, %c0_54] : memref<16x196x128xbf16, #tpu.memory_space<vmem>>, vector<1x196x128xbf16>
    %54 = vector.shape_cast %53 : vector<1x196x128xbf16> to vector<196x128xbf16>
    %cst_55 = arith.constant dense<0.000000e+00> : vector<2x128xf32>
    %55 = tpu.matmul %52, %54, %cst_55 {dimension_numbers = #tpu.dot_dimension_numbers<[1], [0], [0], [1], [0, 0, 1, 1], [], []>} : vector<2x196xbf16>, vector<196x128xbf16>, vector<2x128xf32> -> vector<2x128xf32>
    %c20 = arith.constant 20 : index
    %c0_56 = arith.constant 0 : index
    %56 = vector.load %arg9[%c20, %c0_56] : memref<32x196xbf16, #tpu.memory_space<vmem>>, vector<2x196xbf16>
    %c10_57 = arith.constant 10 : index
    %c0_58 = arith.constant 0 : index
    %c0_59 = arith.constant 0 : index
    %57 = vector.load %arg4[%c10_57, %c0_58, %c0_59] : memref<16x196x128xbf16, #tpu.memory_space<vmem>>, vector<1x196x128xbf16>
    %58 = vector.shape_cast %57 : vector<1x196x128xbf16> to vector<196x128xbf16>
    %cst_60 = arith.constant dense<0.000000e+00> : vector<2x128xf32>
    %59 = tpu.matmul %56, %58, %cst_60 {dimension_numbers = #tpu.dot_dimension_numbers<[1], [0], [0], [1], [0, 0, 1, 1], [], []>} : vector<2x196xbf16>, vector<196x128xbf16>, vector<2x128xf32> -> vector<2x128xf32>
    %c22 = arith.constant 22 : index
    %c0_61 = arith.constant 0 : index
    %60 = vector.load %arg9[%c22, %c0_61] : memref<32x196xbf16, #tpu.memory_space<vmem>>, vector<2x196xbf16>
    %c11 = arith.constant 11 : index
    %c0_62 = arith.constant 0 : index
    %c0_63 = arith.constant 0 : index
    %61 = vector.load %arg4[%c11, %c0_62, %c0_63] : memref<16x196x128xbf16, #tpu.memory_space<vmem>>, vector<1x196x128xbf16>
    %62 = vector.shape_cast %61 : vector<1x196x128xbf16> to vector<196x128xbf16>
    %cst_64 = arith.constant dense<0.000000e+00> : vector<2x128xf32>
    %63 = tpu.matmul %60, %62, %cst_64 {dimension_numbers = #tpu.dot_dimension_numbers<[1], [0], [0], [1], [0, 0, 1, 1], [], []>} : vector<2x196xbf16>, vector<196x128xbf16>, vector<2x128xf32> -> vector<2x128xf32>
    %c24 = arith.constant 24 : index
    %c0_65 = arith.constant 0 : index
    %64 = vector.load %arg9[%c24, %c0_65] : memref<32x196xbf16, #tpu.memory_space<vmem>>, vector<2x196xbf16>
    %c12_66 = arith.constant 12 : index
    %c0_67 = arith.constant 0 : index
    %c0_68 = arith.constant 0 : index
    %65 = vector.load %arg4[%c12_66, %c0_67, %c0_68] : memref<16x196x128xbf16, #tpu.memory_space<vmem>>, vector<1x196x128xbf16>
    %66 = vector.shape_cast %65 : vector<1x196x128xbf16> to vector<196x128xbf16>
    %cst_69 = arith.constant dense<0.000000e+00> : vector<2x128xf32>
    %67 = tpu.matmul %64, %66, %cst_69 {dimension_numbers = #tpu.dot_dimension_numbers<[1], [0], [0], [1], [0, 0, 1, 1], [], []>} : vector<2x196xbf16>, vector<196x128xbf16>, vector<2x128xf32> -> vector<2x128xf32>
    %c26 = arith.constant 26 : index
    %c0_70 = arith.constant 0 : index
    %68 = vector.load %arg9[%c26, %c0_70] : memref<32x196xbf16, #tpu.memory_space<vmem>>, vector<2x196xbf16>
    %c13 = arith.constant 13 : index
    %c0_71 = arith.constant 0 : index
    %c0_72 = arith.constant 0 : index
    %69 = vector.load %arg4[%c13, %c0_71, %c0_72] : memref<16x196x128xbf16, #tpu.memory_space<vmem>>, vector<1x196x128xbf16>
    %70 = vector.shape_cast %69 : vector<1x196x128xbf16> to vector<196x128xbf16>
    %cst_73 = arith.constant dense<0.000000e+00> : vector<2x128xf32>
    %71 = tpu.matmul %68, %70, %cst_73 {dimension_numbers = #tpu.dot_dimension_numbers<[1], [0], [0], [1], [0, 0, 1, 1], [], []>} : vector<2x196xbf16>, vector<196x128xbf16>, vector<2x128xf32> -> vector<2x128xf32>
    %c28 = arith.constant 28 : index
    %c0_74 = arith.constant 0 : index
    %72 = vector.load %arg9[%c28, %c0_74] : memref<32x196xbf16, #tpu.memory_space<vmem>>, vector<2x196xbf16>
    %c14_75 = arith.constant 14 : index
    %c0_76 = arith.constant 0 : index
    %c0_77 = arith.constant 0 : index
    %73 = vector.load %arg4[%c14_75, %c0_76, %c0_77] : memref<16x196x128xbf16, #tpu.memory_space<vmem>>, vector<1x196x128xbf16>
    %74 = vector.shape_cast %73 : vector<1x196x128xbf16> to vector<196x128xbf16>
    %cst_78 = arith.constant dense<0.000000e+00> : vector<2x128xf32>
    %75 = tpu.matmul %72, %74, %cst_78 {dimension_numbers = #tpu.dot_dimension_numbers<[1], [0], [0], [1], [0, 0, 1, 1], [], []>} : vector<2x196xbf16>, vector<196x128xbf16>, vector<2x128xf32> -> vector<2x128xf32>
    %c30 = arith.constant 30 : index
    %c0_79 = arith.constant 0 : index
    %76 = vector.load %arg9[%c30, %c0_79] : memref<32x196xbf16, #tpu.memory_space<vmem>>, vector<2x196xbf16>
    %c15 = arith.constant 15 : index
    %c0_80 = arith.constant 0 : index
    %c0_81 = arith.constant 0 : index
    %77 = vector.load %arg4[%c15, %c0_80, %c0_81] : memref<16x196x128xbf16, #tpu.memory_space<vmem>>, vector<1x196x128xbf16>
    %78 = vector.shape_cast %77 : vector<1x196x128xbf16> to vector<196x128xbf16>
    %cst_82 = arith.constant dense<0.000000e+00> : vector<2x128xf32>
    %79 = tpu.matmul %76, %78, %cst_82 {dimension_numbers = #tpu.dot_dimension_numbers<[1], [0], [0], [1], [0, 0, 1, 1], [], []>} : vector<2x196xbf16>, vector<196x128xbf16>, vector<2x128xf32> -> vector<2x128xf32>
    %80 = arith.addf %19, %23 : vector<2x128xf32>
    %81 = arith.addf %27, %31 : vector<2x128xf32>
    %82 = arith.addf %35, %39 : vector<2x128xf32>
    %83 = arith.addf %43, %47 : vector<2x128xf32>
    %84 = arith.addf %51, %55 : vector<2x128xf32>
    %85 = arith.addf %59, %63 : vector<2x128xf32>
    %86 = arith.addf %67, %71 : vector<2x128xf32>
    %87 = arith.addf %75, %79 : vector<2x128xf32>
    %88 = arith.addf %80, %81 : vector<2x128xf32>
    %89 = arith.addf %82, %83 : vector<2x128xf32>
    %90 = arith.addf %84, %85 : vector<2x128xf32>
    %91 = arith.addf %86, %87 : vector<2x128xf32>
    %92 = arith.addf %88, %89 : vector<2x128xf32>
    %93 = arith.addf %90, %91 : vector<2x128xf32>
    %94 = arith.addf %92, %93 : vector<2x128xf32>
    %c0_83 = arith.constant 0 : index
    %c0_84 = arith.constant 0 : index
    %95 = vector.load %arg5[%c0_83, %c0_84] : memref<1x128xf32, #tpu.memory_space<vmem>>, vector<1x128xf32>
    %96 = vector.broadcast %95 : vector<1x128xf32> to vector<2x128xf32>
    %97 = arith.addf %94, %96 : vector<2x128xf32>
    %cst_85 = arith.constant 0.000000e+00 : f32
    %98 = vector.broadcast %cst_85 : f32 to vector<2x128xf32>
    %99 = arith.cmpf ogt, %97, %98 : vector<2x128xf32>
    %cst_86 = arith.constant 0.000000e+00 : f32
    %100 = vector.broadcast %cst_86 : f32 to vector<2x128xf32>
    %101 = arith.minimumf %97, %100 : vector<2x128xf32>
    %102 = math.exp %101 : vector<2x128xf32>
    %cst_87 = arith.constant 1.000000e+00 : f32
    %103 = vector.broadcast %cst_87 : f32 to vector<2x128xf32>
    %104 = arith.subf %102, %103 : vector<2x128xf32>
    %105 = arith.select %99, %97, %104 : vector<2x128xi1>, vector<2x128xf32>
    %c0_88 = arith.constant 0 : index
    %c0_89 = arith.constant 0 : index
    %106 = vector.load %arg6[%c0_88, %c0_89] : memref<128x128xf32, #tpu.memory_space<vmem>>, vector<128x128xf32>
    %cst_90 = arith.constant dense<0.000000e+00> : vector<2x128xf32>
    %107 = tpu.matmul %105, %106, %cst_90 {dimension_numbers = #tpu.dot_dimension_numbers<[1], [0], [0], [1], [0, 0, 1, 1], [], []>} : vector<2x128xf32>, vector<128x128xf32>, vector<2x128xf32> -> vector<2x128xf32>
    %c0_91 = arith.constant 0 : index
    %c0_92 = arith.constant 0 : index
    %108 = vector.load %arg7[%c0_91, %c0_92] : memref<1x128xf32, #tpu.memory_space<vmem>>, vector<1x128xf32>
    %109 = vector.broadcast %108 : vector<1x128xf32> to vector<2x128xf32>
    %110 = arith.addf %107, %109 : vector<2x128xf32>
    %c0_93 = arith.constant 0 : index
    %c0_94 = arith.constant 0 : index
    %111 = vector.load %arg8[%c0_93, %c0_94] : memref<2x128xf32, #tpu.memory_space<vmem>>, vector<2x128xf32>
    tpu.vector_store %arg8[%c0_93, %c0_94], %110 {strides = array<i32>} : memref<2x128xf32, #tpu.memory_space<vmem>>, vector<2x128xf32>,
    return
  }
  func.func @transform_0(%arg0: i32) -> (i32, i32) {
    %c0_i32 = arith.constant 0 : i32
    %c0_i32_0 = arith.constant 0 : i32
    return %arg0, %c0_i32 : i32, i32
  }
  func.func @transform_1(%arg0: i32) -> (i32, i32) {
    %c0_i32 = arith.constant 0 : i32
    %c0_i32_0 = arith.constant 0 : i32
    %c0_i32_1 = arith.constant 0 : i32
    return %c0_i32, %c0_i32_0 : i32, i32
  }
  func.func @transform_2(%arg0: i32) -> (i32, i32) {
    %c0_i32 = arith.constant 0 : i32
    %c0_i32_0 = arith.constant 0 : i32
    %c0_i32_1 = arith.constant 0 : i32
    return %c0_i32, %c0_i32_0 : i32, i32
  }
  func.func @transform_3(%arg0: i32) -> (i32, i32, i32) {
    %c0_i32 = arith.constant 0 : i32
    %c0_i32_0 = arith.constant 0 : i32
    %c0_i32_1 = arith.constant 0 : i32
    %c0_i32_2 = arith.constant 0 : i32
    return %c0_i32, %c0_i32_0, %c0_i32_1 : i32, i32, i32
  }
  func.func @transform_4(%arg0: i32) -> (i32, i32) {
    %c0_i32 = arith.constant 0 : i32
    %c0_i32_0 = arith.constant 0 : i32
    %c0_i32_1 = arith.constant 0 : i32
    return %c0_i32, %c0_i32_0 : i32, i32
  }
  func.func @transform_5(%arg0: i32) -> (i32, i32) {
    %c0_i32 = arith.constant 0 : i32
    %c0_i32_0 = arith.constant 0 : i32
    %c0_i32_1 = arith.constant 0 : i32
    return %c0_i32, %c0_i32_0 : i32, i32
  }
  func.func @transform_6(%arg0: i32) -> (i32, i32) {
    %c0_i32 = arith.constant 0 : i32
    %c0_i32_0 = arith.constant 0 : i32
    %c0_i32_1 = arith.constant 0 : i32
    return %c0_i32, %c0_i32_0 : i32, i32
  }
  func.func @transform_7(%arg0: i32) -> (i32, i32) {
    %c0_i32 = arith.constant 0 : i32
    %c0_i32_0 = arith.constant 0 : i32
    return %arg0, %c0_i32 : i32, i32
  }
}

</mosaic_0001>

<bundles_post_ra>
// kernel: build_layer_forward.1
= control target key start
LH: loop header
LB: loop body
LE: loop exit
PB: predicated region body
PF: predicated region fallthrough
CT: control target
= control target key end

     0   :  { %vm127_vm0 = vcmask 1043456   ;;  %v3900_v4 = vmov 0   ;;  %vm120_vm1 = vcmask 588800   ;;  %vm405_vm2 = vcmask 1041408   ;;  %s5039_s0 = inlined_call_operand.vmem [shape: bf16[72,196], index: 0, kind: input, shape index: {}]   ;;  %s5040_s1 = inlined_call_operand.vmem [shape: bf16[32,72], index: 1, kind: input, shape index: {}]   ;;  %s5041_s2 = inlined_call_operand.vmem [shape: f32[32,1], index: 2, kind: input, shape index: {}]   ;;  %s5042_s3 = inlined_call_operand.vmem [shape: bf16[16,196,128], index: 3, kind: input, shape index: {}]   ;;  %s5043_s4 = inlined_call_operand.vmem [shape: f32[1,128], index: 4, kind: input, shape index: {}]   ;;  %s5044_s5 = inlined_call_operand.vmem [shape: f32[128,128], index: 5, kind: input, shape index: {}]   ;;  %s5045_s6 = inlined_call_operand.vmem [shape: f32[1,128], index: 6, kind: input, shape index: {}]   ;;  %s5046_s7 = inlined_call_operand.hbm [shape: f32[2,128], index: 7, kind: output, shape index: {}]  }
   0x1   :  { %v40_v0 = vld [vmem:[%s5039_s0 + $0x40] sm:$0xff]  ;;  %v3608_v3 = vld [vmem:[%s5039_s0 + $0x34] ss:$8 sps:$4 sm:$0xff]   ;;  %166 = vmatprep.mubr.bf16.mxu0 %v3900_v4  ;;  %3604 = vset.pattern.permute.xlu0 %v3900_v4  ;;  %v3610_v6 = vld [vmem:[%s5039_s0 + $0x30] ss:$8 sps:$4 sm:$0xff]  }
   0x2   :  { %v2894_v1 = vcombine.high %v40_v0, %v40_v0  ;;  %v2893_v2 = vcombine.low %v40_v0, %v40_v0  ;;  %3605 = vset.pattern.permute.xlu1 %v3900_v4  ;;  %409 = vmatprep.subr.bf16.mxu1 %v3900_v4  ;;  %v3611_v7 = vld [vmem:[%s5039_s0 + $0x24] ss:$8 sps:$4 sm:$0xff]   ;;  %v3613_v8 = vld [vmem:[%s5039_s0 + $0x20] ss:$8 sps:$4 sm:$0xff]   ;;  %v3614_v9 = vld [vmem:[%s5039_s0 + $0x14] ss:$8 sps:$4 sm:$0xff]  }
   0x3   :  { %v41_v10 = vld [vmem:[%s5041_s2] sm:$0xff]  ;;  %v42_v11 = vld [vmem:[%s5041_s2 + $0x8] sm:$0xff]  ;;  %v43_v12 = vld [vmem:[%s5041_s2 + $0x10] sm:$0xff] }
   0x4   :  { %2895 = vmatprep.subr.msk.bf16.mxu0 %vm127_vm0, %v2894_v1  ;;  %v129_v5 = vsel %vm127_vm0, %v2893_v2, 0  ;;  %47 = vperm.xlu0 %3604, %v41_v10   ;;  %v44_v13 = vld [vmem:[%s5041_s2 + $0x18] sm:$0xff]  ;;  %v3617_v16 = vld [vmem:[%s5039_s0 + $0x4] ss:$8 sps:$4 sm:$0xff]   ;;  %v3619_v18 = vld [vmem:[%s5039_s0] ss:$8 sps:$4 sm:$0xff]  }
   0x5   :  { %141 = vmatpush1.bf16.msra.mxu0 %v129_v5  ;;  %57 = vperm.xlu1 %3605, %v43_v12   ;;  %v3622_v14 = vld [vmem:[%s5042_s3 + $0x9c] sm:$0xff]   ;;  %v3616_v15 = vld [vmem:[%s5039_s0 + $0x10] ss:$8 sps:$4 sm:$0xff]   ;;  %v3623_v21 = vld [vmem:[%s5042_s3 + $0x164] sm:$0xff]  }
   0x6   :  { %142 = vmatprep.subr.bf16.mxu0 %v3608_v3  ;;  %410 = vmatpush1.bf16.msra.mxu1 %v3622_v14  ;;  %v3624_v17 = vld [vmem:[%s5042_s3 + $0x94] sm:$0xff]   ;;  %v3626_v19 = vld [vmem:[%s5042_s3 + $0x8c] sm:$0xff]   ;;  %v3620_v20 = vld [vmem:[%s5040_s1] sm:$0xff]  }
   0x7   :  { %411 = vmatprep.subr.bf16.mxu1 %v3900_v4  ;;  %v3625_v22 = vld [vmem:[%s5042_s3 + $0x15c] sm:$0xff]   ;;  %v3621_v23 = vld [vmem:[%s5040_s1 + $0x8] sm:$0xff]   ;;  %v3627_v24 = vld [vmem:[%s5042_s3 + $0x154] sm:$0xff]  }
   0x8   :  { %52 = vperm.xlu0 %3604, %v42_v11   ;;  %v3628_v25 = vld [vmem:[%s5042_s3 + $0x84] sm:$0xff]   ;;  %v3629_v26 = vld [vmem:[%s5042_s3 + $0x14c] sm:$0xff]   ;;  %v3630_v27 = vld [vmem:[%s5042_s3 + $0x7c] sm:$0xff]  }
   0x9   :  { %143 = vmatpush1.bf16.msra.mxu0 %v3610_v6  ;;  %62 = vperm.xlu1 %3605, %v44_v13   ;;  %v3631_v28 = vld [vmem:[%s5042_s3 + $0x144] sm:$0xff]   ;;  %v3632_v29 = vld [vmem:[%s5042_s3 + $0x74] sm:$0xff]   ;;  %v3633_v30 = vld [vmem:[%s5042_s3 + $0x13c] sm:$0xff]  }
   0xa   :  { %144 = vmatprep.subr.bf16.mxu0 %v3611_v7  ;;  %412 = vmatpush1.bf16.msra.mxu1 %v3624_v17  ;;  %v3634_v31 = vld [vmem:[%s5042_s3 + $0x6c] sm:$0xff]   ;;  %v3635_v32 = vld [vmem:[%s5042_s3 + $0x134] sm:$0xff]   ;;  %v3636_v33 = vld [vmem:[%s5042_s3 + $0x64] sm:$0xff]  }
   0xb   :  { %413 = vmatprep.subr.bf16.mxu1 %v3900_v4  ;;  %v3637_v34 = vld [vmem:[%s5042_s3 + $0x12c] sm:$0xff]   ;;  %v3638_v35 = vld [vmem:[%s5042_s3 + $0xc4] ss:$0 sps:$4 sm:$0x33]   ;;  %v3640_v39 = vld [vmem:[%s5042_s3 + $0xbc] sm:$0xff]  }
   0xc   :  { %v3639_v36 = vld [vmem:[%s5042_s3 + $0x18c] ss:$0 sps:$4 sm:$0x33]   ;;  %v407_v37 = vsel %vm405_vm2, %v3638_v35, 0  ;;  %v3641_v40 = vld [vmem:[%s5042_s3 + $0x184] sm:$0xff]   ;;  %v3642_v41 = vld [vmem:[%s5042_s3 + $0xb4] sm:$0xff]  }
   0xd   :  { %145 = vmatpush1.bf16.msra.mxu0 %v3613_v8  ;;  %v590_v38 = vsel %vm405_vm2, %v3639_v36, 0  ;;  %v3643_v42 = vld [vmem:[%s5042_s3 + $0x17c] sm:$0xff]   ;;  %v3644_v43 = vld [vmem:[%s5042_s3 + $0xac] sm:$0xff]   ;;  %v3645_v44 = vld [vmem:[%s5042_s3 + $0x174] sm:$0xff]  }
   0xe   :  { %146 = vmatprep.subr.bf16.mxu0 %v3614_v9  ;;  %414 = vmatpush1.bf16.msra.mxu1 %v3626_v19  ;;  %v3646_v45 = vld [vmem:[%s5042_s3 + $0xa4] sm:$0xff]   ;;  %v3647_v46 = vld [vmem:[%s5042_s3 + $0x16c] sm:$0xff]  }
   0xf   :  { %415 = vmatprep.subr.bf16.mxu1 %v3900_v4 }
  0x11   :  { %147 = vmatpush1.bf16.msra.mxu0 %v3616_v15 }
  0x12   :  { %148 = vmatprep.subr.bf16.mxu0 %v3617_v16  ;;  %416 = vmatpush1.bf16.msra.mxu1 %v3628_v25 }
  0x13   :  { %417 = vmatprep.subr.bf16.mxu1 %v3900_v4 }
  0x15   :  { %149 = vmatpush1.bf16.msra.mxu0 %v3619_v18 }
  0x16   :  { %592 = vmatprep.subr.bf16.mxu0 %v3900_v4  ;;  %418 = vmatpush1.bf16.msra.mxu1 %v3630_v27 }
  0x17   :  { %419 = vmatprep.subr.bf16.mxu1 %v3900_v4 }
  0x18   :  { %2896 = vmatmul.mubr.msk.bf16.vlgmr.msra.gmra.mxu0 %vm120_vm1, %v3620_v20 }
  0x19   :  { %176 = vmatprep.mubr.bf16.mxu0 %v3900_v4  ;;  %593 = vmatpush1.bf16.msra.mxu0 %v3623_v21 }
  0x1a   :  { %594 = vmatprep.subr.bf16.mxu0 %v3900_v4  ;;  %420 = vmatpush1.bf16.msra.mxu1 %v3632_v29 }
  0x1b   :  { %421 = vmatprep.subr.bf16.mxu1 %v3900_v4 }
  0x1d   :  { %595 = vmatpush1.bf16.msra.mxu0 %v3625_v22 }
  0x1e   :  { %596 = vmatprep.subr.bf16.mxu0 %v3900_v4  ;;  %422 = vmatpush1.bf16.msra.mxu1 %v3634_v31 }
  0x1f   :  { %423 = vmatprep.subr.bf16.mxu1 %v3900_v4 }
  0x20   :  { %2897 = vmatmul.mubr.msk.bf16.gmra.mxu0 %vm120_vm1, %v3621_v23 }
  0x21   :  { %597 = vmatpush1.bf16.msra.mxu0 %v3627_v24 }
  0x22   :  { %598 = vmatprep.subr.bf16.mxu0 %v3900_v4  ;;  %424 = vmatpush1.bf16.msra.mxu1 %v3636_v33 }
  0x23   :  { %431 = vmatprep.subr.bf16.mxu1 %v3900_v4 }
  0x25   :  { %599 = vmatpush1.bf16.msra.mxu0 %v3629_v26 }
  0x26   :  { %600 = vmatprep.subr.bf16.mxu0 %v3900_v4  ;;  %432 = vmatpush2.bf16.msra.mxu1 %v407_v37 }
  0x27   :  { %433 = vmatprep.subr.bf16.mxu1 %v3900_v4 }
  0x29   :  { %601 = vmatpush1.bf16.msra.mxu0 %v3631_v28 }
  0x2a   :  { %602 = vmatprep.subr.bf16.mxu0 %v3900_v4  ;;  %434 = vmatpush2.bf16.msra.mxu1 %v3640_v39 }
  0x2b   :  { %435 = vmatprep.subr.bf16.mxu1 %v3900_v4 }
  0x2d   :  { %603 = vmatpush1.bf16.msra.mxu0 %v3633_v30 }
  0x2e   :  { %604 = vmatprep.subr.bf16.mxu0 %v3900_v4  ;;  %436 = vmatpush2.bf16.msra.mxu1 %v3642_v41 }
  0x2f   :  { %437 = vmatprep.subr.bf16.mxu1 %v3900_v4 }
  0x31   :  { %605 = vmatpush1.bf16.msra.mxu0 %v3635_v32 }
  0x32   :  { %606 = vmatprep.subr.bf16.mxu0 %v3900_v4  ;;  %438 = vmatpush2.bf16.msra.mxu1 %v3644_v43 }
  0x33   :  { %439 = vmatprep.subr.bf16.mxu1 %v3900_v4 }
  0x35   :  { %607 = vmatpush1.bf16.msra.mxu0 %v3637_v34 }
  0x36   :  { %614 = vmatprep.subr.bf16.mxu0 %v3900_v4  ;;  %440 = vmatpush2.bf16.msra.mxu1 %v3646_v45 }
  0x37   :  { %775 = vmatprep.subr.bf16.mxu1 %v3900_v4 }
  0x39   :  { %615 = vmatpush2.bf16.msra.mxu0 %v590_v38 }
  0x3a   :  { %616 = vmatprep.subr.bf16.mxu0 %v3900_v4 }
  0x3d   :  { %617 = vmatpush2.bf16.msra.mxu0 %v3641_v40 }
  0x3e   :  { %618 = vmatprep.subr.bf16.mxu0 %v3900_v4 }
  0x41   :  { %619 = vmatpush2.bf16.msra.mxu0 %v3643_v42 }
  0x42   :  { %620 = vmatprep.subr.bf16.mxu0 %v3900_v4 }
  0x45   :  { %621 = vmatpush2.bf16.msra.mxu0 %v3645_v44 }
  0x46   :  { %622 = vmatprep.subr.bf16.mxu0 %v3900_v4 }
  0x49   :  { %623 = vmatpush2.bf16.msra.mxu0 %v3647_v46 }
  0x4a   :  { %958 = vmatprep.subr.bf16.mxu0 %v3900_v4 }
  0x4b   :  { %12 = vsyncpa [#allocation4], 0  ;;  %vm259_vm3 = vcmask 556036   ;;  %vm401_vm13 = vcmask 556032   ;;  %v3675_v25 = vld [vmem:[%s5042_s3 + $0x30c] sm:$0xff]   ;;  %vm3902_vm14 = vmmov 0  }
  0x4c   :  { %vm4106_vm6 = vmor %vm259_vm3, %vm127_vm0  ;;  %s3903_s13 = smov [#allocation3]  }
  0x4d   :  { %s2875_s14 = sshll.u32 %s3903_s13, 4  ;;  %s2876_s14 = int_to_ptr.vmem [resolvable:$true] %s2875_s14 }
  0x4e   :  { %p3883_p1 = scmp.lt.s32.totalorder %s2876_s14, %s2876_s14 }
  0x7f   :  { %v48_v47 = vpop.permute.xlu0 %47 }
  0x80   :  { %v58_v55 = vpop.permute.xlu1 %57 }
  0x83   :  { %v53_v52 = vpop.permute.xlu0 %52 }
  0x84   :  { %v63_v5 = vpop.permute.xlu1 %62 }
  0xd8   :  { %v168_v48 = vpop.f32.mrf.mxu0 }
  0xd9   :  { %v169_v49 = vadd.f32 %v168_v48, %v48_v47 }
  0xda   :  { %v170_v50 = vpop.f32.mrf.mxu0 }
  0xdb   :  { %v195_v51 = vmin.f32 %v169_v49, 0.0  ;;  %v171_v53 = vadd.f32 %v170_v50, %v48_v47  ;;  %vm187_vm4 = vcmp.gt.f32.partialorder %v169_v49, 0.0 }
  0xdc   :  { %v172_v54 = vpop.f32.mrf.mxu0 }
  0xdd   :  { %v203_v56 = vmul.f32 1.442695, %v195_v51  ;;  %v196_v57 = vmin.f32 %v171_v53, 0.0  ;;  %v173_v58 = vadd.f32 %v172_v54, %v53_v52  ;;  %vm188_vm5 = vcmp.gt.f32.partialorder %v171_v53, 0.0 }
  0xde   :  { %v174_v59 = vpop.f32.mrf.mxu0 }
  0xdf   :  { %3860 = vpow2.f32 %v203_v56  ;;  %v205_v60 = vmul.f32 1.442695, %v196_v57  ;;  %v197_v61 = vmin.f32 %v173_v58, 0.0  ;;  %v175_v62 = vadd.f32 %v174_v59, %v53_v52  ;;  %v3652_v57 = vld [vmem:[%s5042_s3 + $0x22c] sm:$0xff]  }
  0xe0   :  { %v178_v63 = vpop.f32.mrf.mxu0  ;;  %vm189_vm8 = vcmp.gt.f32.partialorder %v173_v58, 0.0 }
  0xe1   :  { %3862 = vpow2.f32 %v205_v60  ;;  %v207_v0 = vmul.f32 1.442695, %v197_v61  ;;  %v179_v1 = vadd.f32 %v178_v63, %v58_v55  ;;  %v198_v2 = vmin.f32 %v175_v62, 0.0 }
  0xe2   :  { %v180_v3 = vpop.f32.mrf.mxu0  ;;  %vm190_vm9 = vcmp.gt.f32.partialorder %v175_v62, 0.0 }
  0xe3   :  { %3864 = vpow2.f32 %v207_v0  ;;  %v199_v6 = vmin.f32 %v179_v1, 0.0  ;;  %v181_v7 = vadd.f32 %v180_v3, %v58_v55  ;;  %v209_v8 = vmul.f32 1.442695, %v198_v2  ;;  %v3657_v2 = vld [vmem:[%s5042_s3 + $0x2ec] sm:$0xff]  }
  0xe4   :  { %v182_v9 = vpop.f32.mrf.mxu0  ;;  %vm191_vm7 = vcmp.gt.f32.partialorder %v179_v1, 0.0 }
  0xe5   :  { %v211_v10 = vmul.f32 1.442695, %v199_v6  ;;  %v200_v11 = vmin.f32 %v181_v7, 0.0  ;;  %v183_v12 = vadd.f32 %v182_v9, %v63_v5  ;;  %3866 = vpow2.f32 %v209_v8  ;;  %v3658_v6 = vld [vmem:[%s5042_s3 + $0x21c] sm:$0xff]   ;;  %v3660_v8 = vld [vmem:[%s5042_s3 + $0x214] sm:$0xff]  }
  0xe6   :  { %v184_v13 = vpop.f32.mrf.mxu0  ;;  %vm192_vm10 = vcmp.gt.f32.partialorder %v181_v7, 0.0  ;;  %v3661_v9 = vld [vmem:[%s5042_s3 + $0x2dc] sm:$0xff]  }
  0xe7   :  { %3868 = vpow2.f32 %v211_v10  ;;  %v213_v14 = vmul.f32 1.442695, %v200_v11  ;;  %v201_v15 = vmin.f32 %v183_v12, 0.0  ;;  %v185_v16 = vadd.f32 %v184_v13, %v63_v5  ;;  %v3662_v10 = vld [vmem:[%s5042_s3 + $0x20c] sm:$0xff]   ;;  %v3663_v11 = vld [vmem:[%s5042_s3 + $0x2d4] sm:$0xff]  }
  0xe8   :  { %vm193_vm11 = vcmp.gt.f32.partialorder %v183_v12, 0.0  ;;  %v3665_v13 = vld [vmem:[%s5042_s3 + $0x2cc] sm:$0xff]  }
  0xe9   :  { %3870 = vpow2.f32 %v213_v14  ;;  %v215_v17 = vmul.f32 1.442695, %v201_v15  ;;  %v202_v18 = vmin.f32 %v185_v16, 0.0  ;;  %vm194_vm12 = vcmp.gt.f32.partialorder %v185_v16, 0.0  ;;  %v3666_v14 = vld [vmem:[%s5042_s3 + $0x1fc] sm:$0xff]   ;;  %v3667_v15 = vld [vmem:[%s5042_s3 + $0x2c4] sm:$0xff]  }
  0xeb   :  { %3872 = vpow2.f32 %v215_v17  ;;  %v217_v20 = vmul.f32 1.442695, %v202_v18  ;;  %v3669_v17 = vld [vmem:[%s5042_s3 + $0x2bc] sm:$0xff]   ;;  %v3670_v18 = vld [vmem:[%s5042_s3 + $0x254] ss:$0 sps:$4 sm:$0x33]  }
  0xec   :  { %v3861_v19 = vpop.eup %3860 }
  0xed   :  { %v2898_v21 = vadd.f32 -1.0, %v3861_v19  ;;  %3874 = vpow2.f32 %v217_v20  ;;  %v3671_v19 = vld [vmem:[%s5042_s3 + $0x31c] ss:$0 sps:$4 sm:$0x33]   ;;  %v773_v20 = vsel %vm405_vm2, %v3670_v18, 0  ;;  %v3715_v18 = vld [vmem:[%s5042_s3 + $0x60c] sm:$0xff]  }
  0xee   :  { %v3863_v22 = vpop.eup %3862 }
  0xef   :  { %v2899_v23 = vadd.f32 -1.0, %v3863_v22  ;;  %v227_v26 = vsel %vm187_vm4, %v169_v49, %v2898_v21  ;;  %v956_v21 = vsel %vm405_vm2, %v3671_v19, 0  ;;  %v3672_v22 = vld [vmem:[%s5042_s3 + $0x24c] sm:$0xff]   ;;  %v3716_v19 = vld [vmem:[%s5042_s3 + $0x53c] sm:$0xff]  }
  0xf0   :  { %v3865_v24 = vpop.eup %3864 }
  0xf1   :  { %v228_v27 = vsel %vm188_vm5, %v171_v53, %v2899_v23  ;;  %v2900_v29 = vadd.f32 -1.0, %v3865_v24  ;;  %v3673_v23 = vld [vmem:[%s5042_s3 + $0x314] sm:$0xff]   ;;  %v3674_v24 = vld [vmem:[%s5042_s3 + $0x244] sm:$0xff]  }
  0xf2   :  { %v3544_v28 = vpack.c.bf16 %v228_v27, %v227_v26  ;;  %v3867_v30 = vpop.eup %3866  ;;  %v3676_v26 = vld [vmem:[%s5042_s3 + $0x23c] sm:$0xff]   ;;  %v3677_v27 = vld [vmem:[%s5042_s3 + $0x304] sm:$0xff]  }
  0xf3   :  { %v2901_v32 = vadd.f32 -1.0, %v3867_v30  ;;  %v229_v35 = vsel %vm189_vm8, %v173_v58, %v2900_v29  ;;  %v3653_v58 = vld [vmem:[%s5042_s3 + $0x2f4] sm:$0xff]  }
  0xf4   :  { %v3869_v31 = vpop.eup %3868  ;;  %261 = vst.msk [vmem:[#allocation2] sm:$0xff] %vm4106_vm6, %v3544_v28  ;;  %v3678_v30 = vld [vmem:[%s5042_s3 + $0x234] sm:$0xff]  }
  0xf5   :  { %v2902_v33 = vadd.f32 -1.0, %v3869_v31  ;;  %v230_v36 = vsel %vm190_vm9, %v175_v62, %v2901_v32  ;;  %v3679_v31 = vld [vmem:[%s5042_s3 + $0x2fc] sm:$0xff]  }
  0xf6   :  { %v3871_v34 = vpop.eup %3870  ;;  %v3545_v37 = vpack.c.bf16 %v230_v36, %v229_v35  ;;  %v3680_v36 = vld [vmem:[%s5042_s3 + $0x3bc] sm:$0xff]  }
  0xf7   :  { %v231_v38 = vsel %vm191_vm7, %v179_v1, %v2902_v33  ;;  %v2903_v39 = vadd.f32 -1.0, %v3871_v34  ;;  %v3656_v1 = vld [vmem:[%s5042_s3 + $0x224] sm:$0xff]  }
  0xf8   :  { %v3873_v40 = vpop.eup %3872  ;;  %262 = vst.msk [vmem:[#allocation2 + $0x8] sm:$0xff] %vm4106_vm6, %v3545_v37  ;;  %v3681_v37 = vld [vmem:[%s5042_s3 + $0x484] sm:$0xff]  }
  0xf9   :  { %v232_v41 = vsel %vm192_vm10, %v181_v7, %v2903_v39  ;;  %v2904_v42 = vadd.f32 -1.0, %v3873_v40  ;;  %v3659_v7 = vld [vmem:[%s5042_s3 + $0x2e4] sm:$0xff]  }
  0xfa   :  { %v3546_v43 = vpack.c.bf16 %v232_v41, %v231_v38  ;;  %v3875_v44 = vpop.eup %3874 }
  0xfb   :  { %v291_v45 = vld [vmem:[#allocation2] sm:$0x22]  ;;  %v476_v46 = vld [vmem:[#allocation2] sm:$0x88]  ;;  %v233_v51 = vsel %vm193_vm11, %v183_v12, %v2904_v42  ;;  %v2905_v52 = vadd.f32 -1.0, %v3875_v44  ;;  %v3682_v42 = vld [vmem:[%s5042_s3 + $0x3b4] sm:$0xff]  }
  0xfc   :  { %v2935_v47 = vcombine.low %v291_v45, %v291_v45  ;;  %v2936_v48 = vcombine.high %v291_v45, %v291_v45  ;;  %v3001_v49 = vcombine.low %v476_v46, %v476_v46  ;;  %v3002_v50 = vcombine.high %v476_v46, %v476_v46  ;;  %263 = vst.msk [vmem:[#allocation2 + $0x10] sm:$0xff] %vm4106_vm6, %v3546_v43  ;;  %v3664_v12 = vld [vmem:[%s5042_s3 + $0x204] sm:$0xff]   ;;  %v3683_v43 = vld [vmem:[%s5042_s3 + $0x47c] sm:$0xff]   ;;  %v3684_v44 = vld [vmem:[%s5042_s3 + $0x3ac] sm:$0xff]  }
  0xfd   :  { %v234_v59 = vsel %vm194_vm12, %v185_v16, %v2905_v52  ;;  %v3668_v16 = vld [vmem:[%s5042_s3 + $0x1f4] sm:$0xff]   ;;  %v3686_v46 = vld [vmem:[%s5042_s3 + $0x3a4] sm:$0xff]   ;;  %v3692_v52 = vld [vmem:[%s5042_s3 + $0x38c] sm:$0xff]  }
  0xfe   :  { %v324_v53 = vrot.slane %v2936_v48, 1  ;;  %v508_v54 = vrot.slane %v3001_v49, 3  ;;  %v509_v55 = vrot.slane %v3002_v50, 3  ;;  %v323_v56 = vrot.slane %v2935_v47, 1  ;;  %v3685_v45 = vld [vmem:[%s5042_s3 + $0x474] sm:$0xff]   ;;  %v3687_v47 = vld [vmem:[%s5042_s3 + $0x46c] sm:$0xff]  }
  0xff   :  { %v4124_v60 = vld [vmem:[#allocation2 + $0x8] sm:$0x22]  ;;  %v4126_v61 = vld [vmem:[#allocation2 + $0x8] sm:$0x88]  ;;  %v3547_v62 = vpack.c.bf16 %v234_v59, %v233_v51  ;;  %v3688_v48 = vld [vmem:[%s5042_s3 + $0x39c] sm:$0xff]  }
 0x100   :  { %2950 = vmatprep.mubr.msk.bf16.mxu1 %vm401_vm13, %v324_v53  ;;  %3016 = vmatprep.mubr.msk.bf16.mxu0 %vm401_vm13, %v509_v55  ;;  %v3068_v63 = vcombine.high %v4124_v60, %v4124_v60  ;;  %v3134_v0 = vcombine.high %v4126_v61, %v4126_v61  ;;  %v3067_v32 = vcombine.low %v4124_v60, %v4124_v60  ;;  %v3689_v49 = vld [vmem:[%s5042_s3 + $0x464] sm:$0xff]   ;;  %v3690_v50 = vld [vmem:[%s5042_s3 + $0x394] sm:$0xff]   ;;  %v3691_v51 = vld [vmem:[%s5042_s3 + $0x45c] sm:$0xff]  }
 0x101   :  { %442 = vmatmul.mubr.bf16.vlgmr.msra.gmra.mxu1 %v323_v56  ;;  %625 = vmatmul.mubr.bf16.vlgmr.msra.gmra.mxu0 %v508_v54  ;;  %264 = vst.msk [vmem:[#allocation2 + $0x18] sm:$0xff] %vm4106_vm6, %v3547_v62  ;;  %v3133_v33 = vcombine.low %v4126_v61, %v4126_v61  ;;  %v3693_v53 = vld [vmem:[%s5042_s3 + $0x454] sm:$0xff]   ;;  %v3694_v54 = vld [vmem:[%s5042_s3 + $0x384] sm:$0xff]   ;;  %v3695_v55 = vld [vmem:[%s5042_s3 + $0x44c] sm:$0xff]  }
 0x102   :  { %776 = vmatpush1.bf16.msra.mxu1 %v3652_v57  ;;  %959 = vmatpush1.bf16.msra.mxu0 %v3653_v58  ;;  %v692_v3 = vrot.slane %v3068_v63, 1  ;;  %v875_v5 = vrot.slane %v3134_v0, 3  ;;  %v691_v38 = vrot.slane %v3067_v32, 1  ;;  %v3698_v56 = vld [vmem:[%s5042_s3 + $0x3e4] ss:$0 sps:$4 sm:$0x33]  }
 0x103   :  { %777 = vmatprep.subr.bf16.mxu1 %v3900_v4  ;;  %960 = vmatprep.subr.bf16.mxu0 %v3900_v4  ;;  %v4226_v28 = vld [vmem:[#allocation2 + $0x10] sm:$0x22]  ;;  %v4228_v29 = vld [vmem:[#allocation2 + $0x10] sm:$0x88]  ;;  %v874_v39 = vrot.slane %v3133_v33, 3  ;;  %v1139_v58 = vsel %vm405_vm2, %v3698_v56, 0 }
 0x104   :  { %3082 = vmatprep.mubr.msk.bf16.mxu1 %vm401_vm13, %v692_v3  ;;  %3148 = vmatprep.mubr.msk.bf16.mxu0 %vm401_vm13, %v875_v5  ;;  %v3200_v34 = vcombine.high %v4226_v28, %v4226_v28  ;;  %v3266_v35 = vcombine.high %v4228_v29, %v4228_v29  ;;  %v3699_v57 = vld [vmem:[%s5042_s3 + $0x4ac] ss:$0 sps:$4 sm:$0x33]   ;;  %v3700_v60 = vld [vmem:[%s5042_s3 + $0x3dc] sm:$0xff]   ;;  %v3701_v61 = vld [vmem:[%s5042_s3 + $0x4a4] sm:$0xff]  }
 0x105   :  { %v1322_v59 = vsel %vm405_vm2, %v3699_v57, 0  ;;  %v3702_v62 = vld [vmem:[%s5042_s3 + $0x3d4] sm:$0xff]   ;;  %v3703_v63 = vld [vmem:[%s5042_s3 + $0x49c] sm:$0xff]   ;;  %v3704_v0 = vld [vmem:[%s5042_s3 + $0x3cc] sm:$0xff]  }
 0x106   :  { %778 = vmatpush1.bf16.msra.mxu1 %v3656_v1  ;;  %961 = vmatpush1.bf16.msra.mxu0 %v3657_v2  ;;  %v1058_v40 = vrot.slane %v3200_v34, 1  ;;  %v1241_v41 = vrot.slane %v3266_v35, 3  ;;  %v3705_v1 = vld [vmem:[%s5042_s3 + $0x494] sm:$0xff]   ;;  %v3706_v3 = vld [vmem:[%s5042_s3 + $0x3c4] sm:$0xff]   ;;  %v3707_v5 = vld [vmem:[%s5042_s3 + $0x48c] sm:$0xff]  }
 0x107   :  { %779 = vmatprep.subr.bf16.mxu1 %v3900_v4  ;;  %962 = vmatprep.subr.bf16.mxu0 %v3900_v4  ;;  %v3729_v32 = vld [vmem:[%s5042_s3 + $0x63c] ss:$0 sps:$4 sm:$0x33]   ;;  %v3730_v35 = vld [vmem:[%s5042_s3 + $0x56c] sm:$0xff]  }
 0x108   :  { %v4346_v2 = vld [vmem:[#allocation2 + $0x18] sm:$0x22]  ;;  %v1688_v34 = vsel %vm405_vm2, %v3729_v32, 0  ;;  %v3746_v56 = vld [vmem:[%s5042_s3 + $0x28] sm:$0xff]   ;;  %v3747_v57 = vld [vmem:[%s5042_s3 + $0xf0] sm:$0xff]  }
 0x10a   :  { %780 = vmatpush1.bf16.msra.mxu1 %v3658_v6  ;;  %963 = vmatpush1.bf16.msra.mxu0 %v3659_v7  ;;  %v4354_v6 = vld [vmem:[#allocation2 + $0x18] sm:$0x88]  ;;  %v3199_v7 = vcombine.low %v4226_v28, %v4226_v28  ;;  %v3725_v28 = vld [vmem:[%s5042_s3 + $0x5e4] sm:$0xff]  }
 0x10b   :  { %781 = vmatprep.subr.bf16.mxu1 %v3900_v4  ;;  %964 = vmatprep.subr.bf16.mxu0 %v3900_v4 }
 0x10e   :  { %782 = vmatpush1.bf16.msra.mxu1 %v3660_v8  ;;  %965 = vmatpush1.bf16.msra.mxu0 %v3661_v9  ;;  %v3265_v8 = vcombine.low %v4228_v29, %v4228_v29  ;;  %v3332_v9 = vcombine.high %v4346_v2, %v4346_v2  ;;  %v3726_v29 = vld [vmem:[%s5042_s3 + $0x514] sm:$0xff]  }
 0x10f   :  { %783 = vmatprep.subr.bf16.mxu1 %v3900_v4  ;;  %966 = vmatprep.subr.bf16.mxu0 %v3900_v4 }
 0x112   :  { %784 = vmatpush1.bf16.msra.mxu1 %v3662_v10  ;;  %967 = vmatpush1.bf16.msra.mxu0 %v3663_v11  ;;  %v3398_v10 = vcombine.high %v4354_v6, %v4354_v6  ;;  %v3710_v11 = vld [vmem:[%s5042_s3 + $0x54c] sm:$0xff]  }
 0x113   :  { %785 = vmatprep.subr.bf16.mxu1 %v3900_v4  ;;  %968 = vmatprep.subr.bf16.mxu0 %v3900_v4 }
 0x116   :  { %786 = vmatpush1.bf16.msra.mxu1 %v3664_v12  ;;  %969 = vmatpush1.bf16.msra.mxu0 %v3665_v13  ;;  %v1057_v12 = vrot.slane %v3199_v7, 1  ;;  %v1240_v13 = vrot.slane %v3265_v8, 3 }
 0x117   :  { %787 = vmatprep.subr.bf16.mxu1 %v3900_v4  ;;  %970 = vmatprep.subr.bf16.mxu0 %v3900_v4 }
 0x11a   :  { %788 = vmatpush1.bf16.msra.mxu1 %v3666_v14  ;;  %971 = vmatpush1.bf16.msra.mxu0 %v3667_v15  ;;  %v3712_v14 = vld [vmem:[%s5042_s3 + $0x614] sm:$0xff]   ;;  %v1424_v15 = vrot.slane %v3332_v9, 1 }
 0x11b   :  { %789 = vmatprep.subr.bf16.mxu1 %v3900_v4  ;;  %972 = vmatprep.subr.bf16.mxu0 %v3900_v4  ;;  %v3760_v9 = vld [vmem:[%s5042_s3 + $0x58] sm:$0xff]  }
 0x11e   :  { %790 = vmatpush1.bf16.msra.mxu1 %v3668_v16  ;;  %973 = vmatpush1.bf16.msra.mxu0 %v3669_v17  ;;  %v1607_v16 = vrot.slane %v3398_v10, 3  ;;  %v3714_v17 = vld [vmem:[%s5042_s3 + $0x544] sm:$0xff]  }
 0x11f   :  { %797 = vmatprep.subr.bf16.mxu1 %v3900_v4  ;;  %980 = vmatprep.subr.bf16.mxu0 %v3900_v4  ;;  %v3761_v10 = vld [vmem:[%s5042_s3 + $0x120] sm:$0xff]  }
 0x122   :  { %798 = vmatpush2.bf16.msra.mxu1 %v773_v20  ;;  %981 = vmatpush2.bf16.msra.mxu0 %v956_v21  ;;  %v3717_v20 = vld [vmem:[%s5042_s3 + $0x604] sm:$0xff]   ;;  %v3718_v21 = vld [vmem:[%s5042_s3 + $0x534] sm:$0xff]  }
 0x123   :  { %799 = vmatprep.subr.bf16.mxu1 %v3900_v4  ;;  %982 = vmatprep.subr.bf16.mxu0 %v3900_v4 }
 0x126   :  { %800 = vmatpush2.bf16.msra.mxu1 %v3672_v22  ;;  %983 = vmatpush2.bf16.msra.mxu0 %v3673_v23  ;;  %v3719_v22 = vld [vmem:[%s5042_s3 + $0x5fc] sm:$0xff]   ;;  %v3720_v23 = vld [vmem:[%s5042_s3 + $0x52c] sm:$0xff]  }
 0x127   :  { %801 = vmatprep.subr.bf16.mxu1 %v3900_v4  ;;  %984 = vmatprep.subr.bf16.mxu0 %v3900_v4 }
 0x12a   :  { %802 = vmatpush2.bf16.msra.mxu1 %v3674_v24  ;;  %985 = vmatpush2.bf16.msra.mxu0 %v3675_v25  ;;  %v3721_v24 = vld [vmem:[%s5042_s3 + $0x5f4] sm:$0xff]   ;;  %v3722_v25 = vld [vmem:[%s5042_s3 + $0x524] sm:$0xff]  }
 0x12b   :  { %803 = vmatprep.subr.bf16.mxu1 %v3900_v4  ;;  %986 = vmatprep.subr.bf16.mxu0 %v3900_v4 }
 0x12e   :  { %804 = vmatpush2.bf16.msra.mxu1 %v3676_v26  ;;  %987 = vmatpush2.bf16.msra.mxu0 %v3677_v27  ;;  %v3723_v26 = vld [vmem:[%s5042_s3 + $0x5ec] sm:$0xff]   ;;  %v3724_v27 = vld [vmem:[%s5042_s3 + $0x51c] sm:$0xff]  }
 0x12f   :  { %805 = vmatprep.subr.bf16.mxu1 %v3900_v4  ;;  %988 = vmatprep.subr.bf16.mxu0 %v3900_v4 }
 0x132   :  { %806 = vmatpush2.bf16.msra.mxu1 %v3678_v30  ;;  %989 = vmatpush2.bf16.msra.mxu0 %v3679_v31  ;;  %v3727_v30 = vld [vmem:[%s5042_s3 + $0x5dc] sm:$0xff]   ;;  %v3728_v31 = vld [vmem:[%s5042_s3 + $0x574] ss:$0 sps:$4 sm:$0x33]  }
 0x133   :  { %1141 = vmatprep.subr.bf16.mxu1 %v3900_v4  ;;  %1324 = vmatprep.subr.bf16.mxu0 %v3900_v4  ;;  %v1505_v33 = vsel %vm405_vm2, %v3728_v31, 0  ;;  %v3772_v31 = vld [vmem:[%s5042_s3 + $0x290] sm:$0xff]  }
 0x135   :  { %808 = vmatmul.mubr.bf16.vlgmr.msra.gmra.mxu1 %v691_v38  ;;  %991 = vmatmul.mubr.bf16.vlgmr.msra.gmra.mxu0 %v874_v39  ;;  %v3733_v38 = vld [vmem:[%s5042_s3 + $0x62c] sm:$0xff]   ;;  %v3734_v39 = vld [vmem:[%s5042_s3 + $0x55c] sm:$0xff]  }
 0x136   :  { %1142 = vmatpush1.bf16.msra.mxu1 %v3680_v36  ;;  %1325 = vmatpush1.bf16.msra.mxu0 %v3681_v37  ;;  %v3731_v36 = vld [vmem:[%s5042_s3 + $0x634] sm:$0xff]   ;;  %v3732_v37 = vld [vmem:[%s5042_s3 + $0x564] sm:$0xff]  }
 0x137   :  { %1143 = vmatprep.subr.bf16.mxu1 %v3900_v4  ;;  %1326 = vmatprep.subr.bf16.mxu0 %v3900_v4 }
 0x138   :  { %3214 = vmatprep.mubr.msk.bf16.mxu1 %vm401_vm13, %v1058_v40  ;;  %3280 = vmatprep.mubr.msk.bf16.mxu0 %vm401_vm13, %v1241_v41  ;;  %v3735_v40 = vld [vmem:[%s5042_s3 + $0x624] sm:$0xff]   ;;  %v3736_v41 = vld [vmem:[%s5042_s3 + $0x554] sm:$0xff]  }
 0x13a   :  { %1144 = vmatpush1.bf16.msra.mxu1 %v3682_v42  ;;  %1327 = vmatpush1.bf16.msra.mxu0 %v3683_v43  ;;  %v3737_v42 = vld [vmem:[%s5042_s3 + $0x61c] sm:$0xff]   ;;  %v3331_v43 = vcombine.low %v4346_v2, %v4346_v2 }
 0x13b   :  { %1145 = vmatprep.subr.bf16.mxu1 %v3900_v4  ;;  %1328 = vmatprep.subr.bf16.mxu0 %v3900_v4  ;;  %v3756_v2 = vld [vmem:[%s5042_s3] sm:$0xff]  }
 0x13e   :  { %1146 = vmatpush1.bf16.msra.mxu1 %v3684_v44  ;;  %1329 = vmatpush1.bf16.msra.mxu0 %v3685_v45  ;;  %v4475_v44 = vld [vmem:[#allocation2] sm:$0x44]  ;;  %v3397_v45 = vcombine.low %v4354_v6, %v4354_v6  ;;  %v3759_v6 = vld [vmem:[%s5042_s3 + $0x128] ss:$0 sps:$4 sm:$0x33]  }
 0x13f   :  { %1147 = vmatprep.subr.bf16.mxu1 %v3900_v4  ;;  %1330 = vmatprep.subr.bf16.mxu0 %v3900_v4  ;;  %v1944_v8 = vsel %vm405_vm2, %v3759_v6, 0  ;;  %v4721_v6 = vld [vmem:[#allocation2 + $0x10] sm:$0x44] }
 0x142   :  { %1148 = vmatpush1.bf16.msra.mxu1 %v3686_v46  ;;  %1331 = vmatpush1.bf16.msra.mxu0 %v3687_v47  ;;  %v3740_v46 = vld [vmem:[%s5042_s3 + $0x38] sm:$0xff]   ;;  %v4483_v47 = vld [vmem:[#allocation2] sm:$0x11] }
 0x143   :  { %1149 = vmatprep.subr.bf16.mxu1 %v3900_v4  ;;  %1332 = vmatprep.subr.bf16.mxu0 %v3900_v4 }
 0x146   :  { %1150 = vmatpush1.bf16.msra.mxu1 %v3688_v48  ;;  %1333 = vmatpush1.bf16.msra.mxu0 %v3689_v49  ;;  %v3430_v48 = vcombine.high %v4475_v44, %v4475_v44  ;;  %v1423_v49 = vrot.slane %v3331_v43, 1  ;;  %v3782_v43 = vld [vmem:[%s5042_s3 + $0x1a0] sm:$0xff]  }
 0x147   :  { %1151 = vmatprep.subr.bf16.mxu1 %v3900_v4  ;;  %1334 = vmatprep.subr.bf16.mxu0 %v3900_v4 }
 0x14a   :  { %1152 = vmatpush1.bf16.msra.mxu1 %v3690_v50  ;;  %1335 = vmatpush1.bf16.msra.mxu0 %v3691_v51  ;;  %v3742_v50 = vld [vmem:[%s5042_s3 + $0x100] sm:$0xff]   ;;  %v1606_v51 = vrot.slane %v3397_v45, 3  ;;  %v3784_v45 = vld [vmem:[%s5042_s3 + $0x198] sm:$0xff]  }
 0x14b   :  { %1153 = vmatprep.subr.bf16.mxu1 %v3900_v4  ;;  %1336 = vmatprep.subr.bf16.mxu0 %v3900_v4 }
 0x14e   :  { %1154 = vmatpush1.bf16.msra.mxu1 %v3692_v52  ;;  %1337 = vmatpush1.bf16.msra.mxu0 %v3693_v53  ;;  %v3414_v52 = vcombine.high %v4483_v47, %v4483_v47  ;;  %v1863_v53 = vrot.slane %v3430_v48, 2  ;;  %v3787_v48 = vld [vmem:[%s5042_s3 + $0x258] sm:$0xff]  }
 0x14f   :  { %1155 = vmatprep.subr.bf16.mxu1 %v3900_v4  ;;  %1338 = vmatprep.subr.bf16.mxu0 %v3900_v4 }
 0x152   :  { %1156 = vmatpush1.bf16.msra.mxu1 %v3694_v54  ;;  %1339 = vmatpush1.bf16.msra.mxu0 %v3695_v55  ;;  %v3744_v54 = vld [vmem:[%s5042_s3 + $0x30] sm:$0xff]   ;;  %v3745_v55 = vld [vmem:[%s5042_s3 + $0xf8] sm:$0xff]  }
 0x153   :  { %1163 = vmatprep.subr.bf16.mxu1 %v3900_v4  ;;  %1346 = vmatprep.subr.bf16.mxu0 %v3900_v4 }
 0x156   :  { %1164 = vmatpush2.bf16.msra.mxu1 %v1139_v58  ;;  %1347 = vmatpush2.bf16.msra.mxu0 %v1322_v59  ;;  %v3748_v58 = vld [vmem:[%s5042_s3 + $0x20] sm:$0xff]   ;;  %v3749_v59 = vld [vmem:[%s5042_s3 + $0xe8] sm:$0xff]  }
 0x157   :  { %1165 = vmatprep.subr.bf16.mxu1 %v3900_v4  ;;  %1348 = vmatprep.subr.bf16.mxu0 %v3900_v4 }
 0x15a   :  { %1166 = vmatpush2.bf16.msra.mxu1 %v3700_v60  ;;  %1349 = vmatpush2.bf16.msra.mxu0 %v3701_v61  ;;  %v3750_v60 = vld [vmem:[%s5042_s3 + $0x18] sm:$0xff]   ;;  %v3751_v61 = vld [vmem:[%s5042_s3 + $0xe0] sm:$0xff]  }
 0x15b   :  { %1167 = vmatprep.subr.bf16.mxu1 %v3900_v4  ;;  %1350 = vmatprep.subr.bf16.mxu0 %v3900_v4 }
 0x15e   :  { %1168 = vmatpush2.bf16.msra.mxu1 %v3702_v62  ;;  %1351 = vmatpush2.bf16.msra.mxu0 %v3703_v63  ;;  %v3752_v62 = vld [vmem:[%s5042_s3 + $0x10] sm:$0xff]   ;;  %v3753_v63 = vld [vmem:[%s5042_s3 + $0xd8] sm:$0xff]  }
 0x15f   :  { %1169 = vmatprep.subr.bf16.mxu1 %v3900_v4  ;;  %1352 = vmatprep.subr.bf16.mxu0 %v3900_v4 }
 0x162   :  { %1170 = vmatpush2.bf16.msra.mxu1 %v3704_v0  ;;  %1353 = vmatpush2.bf16.msra.mxu0 %v3705_v1  ;;  %v3754_v0 = vld [vmem:[%s5042_s3 + $0x8] sm:$0xff]   ;;  %v3755_v1 = vld [vmem:[%s5042_s3 + $0xd0] sm:$0xff]  }
 0x163   :  { %1171 = vmatprep.subr.bf16.mxu1 %v3900_v4  ;;  %1354 = vmatprep.subr.bf16.mxu0 %v3900_v4 }
 0x166   :  { %1172 = vmatpush2.bf16.msra.mxu1 %v3706_v3  ;;  %1355 = vmatpush2.bf16.msra.mxu0 %v3707_v5  ;;  %v3757_v3 = vld [vmem:[%s5042_s3 + $0xc8] sm:$0xff]   ;;  %v3758_v5 = vld [vmem:[%s5042_s3 + $0x60] ss:$0 sps:$4 sm:$0x33]  }
 0x167   :  { %1507 = vmatprep.subr.bf16.mxu1 %v3900_v4  ;;  %1690 = vmatprep.subr.bf16.mxu0 %v3900_v4  ;;  %v1815_v7 = vsel %vm405_vm2, %v3758_v5, 0  ;;  %v3797_v5 = vld [vmem:[%s5042_s3 + $0x298] sm:$0xff]  }
 0x169   :  { %1174 = vmatmul.mubr.bf16.vlgmr.msra.gmra.mxu1 %v1057_v12  ;;  %1357 = vmatmul.mubr.bf16.vlgmr.msra.gmra.mxu0 %v1240_v13  ;;  %v3762_v13 = vld [vmem:[%s5042_s3 + $0x50] sm:$0xff]  }
 0x16a   :  { %1508 = vmatpush1.bf16.msra.mxu1 %v3710_v11  ;;  %3346 = vmatprep.mubr.msk.bf16.mxu1 %vm401_vm13, %v1424_v15 }
 0x16b   :  { %1691 = vmatpush1.bf16.msra.mxu0 %v3712_v14  ;;  %3412 = vmatprep.mubr.msk.bf16.mxu0 %vm401_vm13, %v1607_v16  ;;  %v3763_v16 = vld [vmem:[%s5042_s3 + $0x118] sm:$0xff]  }
 0x16c   :  { %1509 = vmatprep.subr.bf16.mxu1 %v3900_v4  ;;  %1692 = vmatprep.subr.bf16.mxu0 %v3900_v4 }
 0x16e   :  { %1510 = vmatpush1.bf16.msra.mxu1 %v3714_v17 }
 0x16f   :  { %1693 = vmatpush1.bf16.msra.mxu0 %v3715_v18  ;;  %1511 = vmatprep.subr.bf16.mxu1 %v3900_v4 }
 0x170   :  { %1694 = vmatprep.subr.bf16.mxu0 %v3900_v4 }
 0x172   :  { %1512 = vmatpush1.bf16.msra.mxu1 %v3716_v19  ;;  %v3764_v19 = vld [vmem:[%s5042_s3 + $0x48] sm:$0xff]  }
 0x173   :  { %1695 = vmatpush1.bf16.msra.mxu0 %v3717_v20  ;;  %1513 = vmatprep.subr.bf16.mxu1 %v3900_v4 }
 0x174   :  { %1696 = vmatprep.subr.bf16.mxu0 %v3900_v4 }
 0x176   :  { %1514 = vmatpush1.bf16.msra.mxu1 %v3718_v21 }
 0x177   :  { %1697 = vmatpush1.bf16.msra.mxu0 %v3719_v22  ;;  %1515 = vmatprep.subr.bf16.mxu1 %v3900_v4  ;;  %v3765_v22 = vld [vmem:[%s5042_s3 + $0x110] sm:$0xff]  }
 0x178   :  { %1698 = vmatprep.subr.bf16.mxu0 %v3900_v4 }
 0x17a   :  { %1516 = vmatpush1.bf16.msra.mxu1 %v3720_v23  ;;  %v3766_v23 = vld [vmem:[%s5042_s3 + $0x40] sm:$0xff]  }
 0x17b   :  { %1699 = vmatpush1.bf16.msra.mxu0 %v3721_v24  ;;  %1517 = vmatprep.subr.bf16.mxu1 %v3900_v4  ;;  %v3767_v24 = vld [vmem:[%s5042_s3 + $0x108] sm:$0xff]  }
 0x17c   :  { %1700 = vmatprep.subr.bf16.mxu0 %v3900_v4 }
 0x17e   :  { %1518 = vmatpush1.bf16.msra.mxu1 %v3722_v25  ;;  %v4597_v25 = vld [vmem:[#allocation2 + $0x8] sm:$0x44] }
 0x17f   :  { %1701 = vmatpush1.bf16.msra.mxu0 %v3723_v26  ;;  %1519 = vmatprep.subr.bf16.mxu1 %v3900_v4  ;;  %v3429_v26 = vcombine.low %v4475_v44, %v4475_v44  ;;  %v3783_v44 = vld [vmem:[%s5042_s3 + $0x268] sm:$0xff]  }
 0x180   :  { %1702 = vmatprep.subr.bf16.mxu0 %v3900_v4 }
 0x181   :  { %v1862_v32 = vrot.slane %v3429_v26, 2  ;;  %v3812_v26 = vld [vmem:[%s5042_s3 + $0x330] sm:$0xff]  }
 0x182   :  { %1520 = vmatpush1.bf16.msra.mxu1 %v3724_v27  ;;  %v3770_v27 = vld [vmem:[%s5042_s3 + $0x1c8] sm:$0xff]  }
 0x183   :  { %1703 = vmatpush1.bf16.msra.mxu0 %v3725_v28  ;;  %1521 = vmatprep.subr.bf16.mxu1 %v3900_v4  ;;  %v4605_v28 = vld [vmem:[#allocation2 + $0x8] sm:$0x11] }
 0x184   :  { %1704 = vmatprep.subr.bf16.mxu0 %v3900_v4 }
 0x186   :  { %1522 = vmatpush1.bf16.msra.mxu1 %v3726_v29  ;;  %v3462_v29 = vcombine.high %v4597_v25, %v4597_v25 }
 0x187   :  { %1705 = vmatpush1.bf16.msra.mxu0 %v3727_v30  ;;  %1529 = vmatprep.subr.bf16.mxu1 %v3900_v4  ;;  %v3413_v30 = vcombine.low %v4483_v47, %v4483_v47  ;;  %v3786_v47 = vld [vmem:[%s5042_s3 + $0x190] sm:$0xff]  }
 0x188   :  { %1712 = vmatprep.subr.bf16.mxu0 %v3900_v4 }
 0x18a   :  { %1530 = vmatpush2.bf16.msra.mxu1 %v1505_v33  ;;  %v3446_v33 = vcombine.high %v4605_v28, %v4605_v28 }
 0x18b   :  { %1713 = vmatpush2.bf16.msra.mxu0 %v1688_v34  ;;  %1531 = vmatprep.subr.bf16.mxu1 %v3900_v4  ;;  %v2119_v34 = vrot.slane %v3462_v29, 2  ;;  %v3815_v29 = vld [vmem:[%s5042_s3 + $0x3f0] sm:$0xff]  }
 0x18c   :  { %1714 = vmatprep.subr.bf16.mxu0 %v3900_v4 }
 0x18e   :  { %1532 = vmatpush2.bf16.msra.mxu1 %v3730_v35  ;;  %v3774_v35 = vld [vmem:[%s5042_s3 + $0x1c0] sm:$0xff]  }
 0x18f   :  { %1715 = vmatpush2.bf16.msra.mxu0 %v3731_v36  ;;  %1533 = vmatprep.subr.bf16.mxu1 %v3900_v4  ;;  %v3775_v36 = vld [vmem:[%s5042_s3 + $0x288] sm:$0xff]  }
 0x190   :  { %1716 = vmatprep.subr.bf16.mxu0 %v3900_v4 }
 0x192   :  { %1534 = vmatpush2.bf16.msra.mxu1 %v3732_v37  ;;  %v3776_v37 = vld [vmem:[%s5042_s3 + $0x1b8] sm:$0xff]  }
 0x193   :  { %1717 = vmatpush2.bf16.msra.mxu0 %v3733_v38  ;;  %1535 = vmatprep.subr.bf16.mxu1 %v3900_v4  ;;  %v3777_v38 = vld [vmem:[%s5042_s3 + $0x280] sm:$0xff]  }
 0x194   :  { %1718 = vmatprep.subr.bf16.mxu0 %v3900_v4 }
 0x196   :  { %1536 = vmatpush2.bf16.msra.mxu1 %v3734_v39  ;;  %v3778_v39 = vld [vmem:[%s5042_s3 + $0x1b0] sm:$0xff]  }
 0x197   :  { %1719 = vmatpush2.bf16.msra.mxu0 %v3735_v40  ;;  %1537 = vmatprep.subr.bf16.mxu1 %v3900_v4  ;;  %v3779_v40 = vld [vmem:[%s5042_s3 + $0x278] sm:$0xff]  }
 0x198   :  { %1720 = vmatprep.subr.bf16.mxu0 %v3900_v4 }
 0x19a   :  { %1538 = vmatpush2.bf16.msra.mxu1 %v3736_v41  ;;  %v3780_v41 = vld [vmem:[%s5042_s3 + $0x1a8] sm:$0xff]  }
 0x19b   :  { %1721 = vmatpush2.bf16.msra.mxu0 %v3737_v42  ;;  %1817 = vmatprep.subr.bf16.mxu1 %v3900_v4  ;;  %v3781_v42 = vld [vmem:[%s5042_s3 + $0x270] sm:$0xff]  }
 0x19c   :  { %1946 = vmatprep.subr.bf16.mxu0 %v3900_v4 }
 0x19d   :  { %1540 = vmatmul.mubr.bf16.vlgmr.msra.gmra.mxu1 %v1423_v49  ;;  %v3788_v49 = vld [vmem:[%s5042_s3 + $0x1f0] ss:$0 sps:$4 sm:$0x33]  }
 0x19e   :  { %1723 = vmatmul.mubr.bf16.vlgmr.msra.gmra.mxu0 %v1606_v51  ;;  %1818 = vmatpush1.bf16.msra.mxu1 %v3740_v46  ;;  %v3785_v46 = vld [vmem:[%s5042_s3 + $0x260] sm:$0xff]   ;;  %v2071_v51 = vsel %vm405_vm2, %v3788_v49, 0  ;;  %v3825_v49 = vld [vmem:[%s5042_s3 + $0x430] sm:$0xff]  }
 0x19f   :  { %3428 = vmatprep.mubr.msk.bf16.mxu1 %vm401_vm13, %v3414_v52  ;;  %1947 = vmatpush1.bf16.msra.mxu0 %v3742_v50  ;;  %v3789_v50 = vld [vmem:[%s5042_s3 + $0x2b8] ss:$0 sps:$4 sm:$0x33]  }
 0x1a0   :  { %3444 = vmatprep.mubr.msk.bf16.mxu0 %vm401_vm13, %v1863_v53  ;;  %1819 = vmatprep.subr.bf16.mxu1 %v3900_v4  ;;  %v2200_v52 = vsel %vm405_vm2, %v3789_v50, 0  ;;  %v3790_v53 = vld [vmem:[%s5042_s3 + $0x1e8] sm:$0xff]   ;;  %v3826_v50 = vld [vmem:[%s5042_s3 + $0x360] sm:$0xff]  }
 0x1a1   :  { %1948 = vmatprep.subr.bf16.mxu0 %v3900_v4 }
 0x1a2   :  { %1820 = vmatpush1.bf16.msra.mxu1 %v3744_v54  ;;  %v3791_v54 = vld [vmem:[%s5042_s3 + $0x2b0] sm:$0xff]  }
 0x1a3   :  { %1949 = vmatpush1.bf16.msra.mxu0 %v3745_v55  ;;  %1821 = vmatprep.subr.bf16.mxu1 %v3900_v4 }
 0x1a4   :  { %1950 = vmatprep.subr.bf16.mxu0 %v3900_v4 }
 0x1a6   :  { %1822 = vmatpush1.bf16.msra.mxu1 %v3746_v56 }
 0x1a7   :  { %1951 = vmatpush1.bf16.msra.mxu0 %v3747_v57  ;;  %1823 = vmatprep.subr.bf16.mxu1 %v3900_v4  ;;  %v3792_v57 = vld [vmem:[%s5042_s3 + $0x1e0] sm:$0xff]  }
 0x1a8   :  { %1952 = vmatprep.subr.bf16.mxu0 %v3900_v4 }
 0x1aa   :  { %1824 = vmatpush1.bf16.msra.mxu1 %v3748_v58 }
 0x1ab   :  { %1953 = vmatpush1.bf16.msra.mxu0 %v3749_v59  ;;  %1825 = vmatprep.subr.bf16.mxu1 %v3900_v4 }
 0x1ac   :  { %1954 = vmatprep.subr.bf16.mxu0 %v3900_v4 }
 0x1ae   :  { %1826 = vmatpush1.bf16.msra.mxu1 %v3750_v60  ;;  %v3793_v60 = vld [vmem:[%s5042_s3 + $0x2a8] sm:$0xff]  }
 0x1af   :  { %1955 = vmatpush1.bf16.msra.mxu0 %v3751_v61  ;;  %1827 = vmatprep.subr.bf16.mxu1 %v3900_v4 }
 0x1b0   :  { %1956 = vmatprep.subr.bf16.mxu0 %v3900_v4 }
 0x1b2   :  { %1828 = vmatpush1.bf16.msra.mxu1 %v3752_v62 }
 0x1b3   :  { %1957 = vmatpush1.bf16.msra.mxu0 %v3753_v63  ;;  %1829 = vmatprep.subr.bf16.mxu1 %v3900_v4  ;;  %v3794_v63 = vld [vmem:[%s5042_s3 + $0x1d8] sm:$0xff]  }
 0x1b4   :  { %1958 = vmatprep.subr.bf16.mxu0 %v3900_v4 }
 0x1b6   :  { %1830 = vmatpush1.bf16.msra.mxu1 %v3754_v0 }
 0x1b7   :  { %1959 = vmatpush1.bf16.msra.mxu0 %v3755_v1  ;;  %1831 = vmatprep.subr.bf16.mxu1 %v3900_v4 }
 0x1b8   :  { %1960 = vmatprep.subr.bf16.mxu0 %v3900_v4 }
 0x1ba   :  { %1832 = vmatpush1.bf16.msra.mxu1 %v3756_v2  ;;  %v3795_v2 = vld [vmem:[%s5042_s3 + $0x2a0] sm:$0xff]  }
 0x1bb   :  { %1961 = vmatpush1.bf16.msra.mxu0 %v3757_v3  ;;  %1839 = vmatprep.subr.bf16.mxu1 %v3900_v4  ;;  %v3796_v3 = vld [vmem:[%s5042_s3 + $0x1d0] sm:$0xff]  }
 0x1bc   :  { %1968 = vmatprep.subr.bf16.mxu0 %v3900_v4 }
 0x1be   :  { %1840 = vmatpush2.bf16.msra.mxu1 %v1815_v7  ;;  %v3461_v7 = vcombine.low %v4597_v25, %v4597_v25  ;;  %v3811_v25 = vld [vmem:[%s5042_s3 + $0x400] sm:$0xff]  }
 0x1bf   :  { %1969 = vmatpush2.bf16.msra.mxu0 %v1944_v8  ;;  %1841 = vmatprep.subr.bf16.mxu1 %v3900_v4  ;;  %v3800_v8 = vld [vmem:[%s5042_s3 + $0x358] sm:$0xff]  }
 0x1c0   :  { %1970 = vmatprep.subr.bf16.mxu0 %v3900_v4 }
 0x1c1   :  { %v4570_v11 = vpop.f32.mrf.mxu1  ;;  %v4572_v12 = vpop.f32.mrf.mxu0 }
 0x1c2   :  { %1842 = vmatpush2.bf16.msra.mxu1 %v3760_v9  ;;  %v4729_v9 = vld [vmem:[#allocation2 + $0x10] sm:$0x11] }
 0x1c3   :  { %1971 = vmatpush2.bf16.msra.mxu0 %v3761_v10  ;;  %v445_v14 = vpop.f32.mrf.mxu1  ;;  %v628_v15 = vpop.f32.mrf.mxu0  ;;  %1843 = vmatprep.subr.bf16.mxu1 %v3900_v4  ;;  %v3494_v10 = vcombine.high %v4721_v6, %v4721_v6 }
 0x1c4   :  { %1972 = vmatprep.subr.bf16.mxu0 %v3900_v4  ;;  %v3802_v14 = vld [vmem:[%s5042_s3 + $0x420] sm:$0xff]   ;;  %v2118_v15 = vrot.slane %v3461_v7, 2  ;;  %v3840_v7 = vld [vmem:[%s5042_s3 + $0x4c8] sm:$0xff]  }
 0x1c5   :  { %v446_v17 = vpop.f32.mrf.mxu1  ;;  %v629_v18 = vpop.f32.mrf.mxu0 }
 0x1c6   :  { %1844 = vmatpush2.bf16.msra.mxu1 %v3762_v13  ;;  %v3445_v13 = vcombine.low %v4605_v28, %v4605_v28  ;;  %v2375_v17 = vrot.slane %v3494_v10, 2  ;;  %v3804_v18 = vld [vmem:[%s5042_s3 + $0x350] sm:$0xff]   ;;  %v3814_v28 = vld [vmem:[%s5042_s3 + $0x328] sm:$0xff]  }
 0x1c7   :  { %1973 = vmatpush2.bf16.msra.mxu0 %v3763_v16  ;;  %v447_v20 = vpop.f32.mrf.mxu1  ;;  %v630_v21 = vpop.f32.mrf.mxu0  ;;  %1845 = vmatprep.subr.bf16.mxu1 %v3900_v4  ;;  %v3478_v16 = vcombine.high %v4729_v9, %v4729_v9  ;;  %v3843_v10 = vld [vmem:[%s5042_s3 + $0x588] sm:$0xff]  }
 0x1c8   :  { %1974 = vmatprep.subr.bf16.mxu0 %v3900_v4  ;;  %v3806_v20 = vld [vmem:[%s5042_s3 + $0x348] sm:$0xff]   ;;  %v3807_v21 = vld [vmem:[%s5042_s3 + $0x410] sm:$0xff]  }
 0x1ca   :  { %1846 = vmatpush2.bf16.msra.mxu1 %v3764_v19  ;;  %v3805_v19 = vld [vmem:[%s5042_s3 + $0x418] sm:$0xff]  }
 0x1cb   :  { %1975 = vmatpush2.bf16.msra.mxu0 %v3765_v22  ;;  %1847 = vmatprep.subr.bf16.mxu1 %v3900_v4  ;;  %v3808_v22 = vld [vmem:[%s5042_s3 + $0x340] sm:$0xff]  }
 0x1cc   :  { %1976 = vmatprep.subr.bf16.mxu0 %v3900_v4 }
 0x1ce   :  { %1848 = vmatpush2.bf16.msra.mxu1 %v3766_v23  ;;  %v3809_v23 = vld [vmem:[%s5042_s3 + $0x408] sm:$0xff]  }
 0x1cf   :  { %1977 = vmatpush2.bf16.msra.mxu0 %v3767_v24  ;;  %2073 = vmatprep.subr.bf16.mxu1 %v3900_v4  ;;  %v3810_v24 = vld [vmem:[%s5042_s3 + $0x338] sm:$0xff]  }
 0x1d0   :  { %2202 = vmatprep.subr.bf16.mxu0 %v3900_v4 }
 0x1d1   :  { %1850 = vmatmul.mubr.bf16.vlgmr.msra.gmra.mxu1 %v3413_v30  ;;  %v3816_v30 = vld [vmem:[%s5042_s3 + $0x320] sm:$0xff]  }
 0x1d2   :  { %1979 = vmatmul.mubr.bf16.vlgmr.msra.gmra.mxu0 %v1862_v32  ;;  %2074 = vmatpush1.bf16.msra.mxu1 %v3770_v27  ;;  %v3813_v27 = vld [vmem:[%s5042_s3 + $0x3f8] sm:$0xff]   ;;  %v3818_v32 = vld [vmem:[%s5042_s3 + $0x380] ss:$0 sps:$4 sm:$0x33]  }
 0x1d3   :  { %3460 = vmatprep.mubr.msk.bf16.mxu1 %vm401_vm13, %v3446_v33  ;;  %2203 = vmatpush1.bf16.msra.mxu0 %v3772_v31  ;;  %v3817_v31 = vld [vmem:[%s5042_s3 + $0x3e8] sm:$0xff]  }
 0x1d4   :  { %3476 = vmatprep.mubr.msk.bf16.mxu0 %vm401_vm13, %v2119_v34  ;;  %2075 = vmatprep.subr.bf16.mxu1 %v3900_v4  ;;  %v3819_v33 = vld [vmem:[%s5042_s3 + $0x448] ss:$0 sps:$4 sm:$0x33]   ;;  %v2327_v34 = vsel %vm405_vm2, %v3818_v32, 0 }
 0x1d5   :  { %2204 = vmatprep.subr.bf16.mxu0 %v3900_v4 }
 0x1d6   :  { %2076 = vmatpush1.bf16.msra.mxu1 %v3774_v35  ;;  %v2456_v35 = vsel %vm405_vm2, %v3819_v33, 0  ;;  %v3855_v33 = vld [vmem:[%s5042_s3 + $0x5c0] sm:$0xff]  }
 0x1d7   :  { %2205 = vmatpush1.bf16.msra.mxu0 %v3775_v36  ;;  %2077 = vmatprep.subr.bf16.mxu1 %v3900_v4  ;;  %v3820_v36 = vld [vmem:[%s5042_s3 + $0x378] sm:$0xff]  }
 0x1d8   :  { %2206 = vmatprep.subr.bf16.mxu0 %v3900_v4 }
 0x1da   :  { %2078 = vmatpush1.bf16.msra.mxu1 %v3776_v37  ;;  %v3821_v37 = vld [vmem:[%s5042_s3 + $0x440] sm:$0xff]  }
 0x1db   :  { %2207 = vmatpush1.bf16.msra.mxu0 %v3777_v38  ;;  %2079 = vmatprep.subr.bf16.mxu1 %v3900_v4 }
 0x1dc   :  { %2208 = vmatprep.subr.bf16.mxu0 %v3900_v4 }
 0x1de   :  { %2080 = vmatpush1.bf16.msra.mxu1 %v3778_v39 }
 0x1df   :  { %2209 = vmatpush1.bf16.msra.mxu0 %v3779_v40  ;;  %2081 = vmatprep.subr.bf16.mxu1 %v3900_v4  ;;  %v3822_v40 = vld [vmem:[%s5042_s3 + $0x370] sm:$0xff]  }
 0x1e0   :  { %2210 = vmatprep.subr.bf16.mxu0 %v3900_v4 }
 0x1e2   :  { %2082 = vmatpush1.bf16.msra.mxu1 %v3780_v41 }
 0x1e3   :  { %2211 = vmatpush1.bf16.msra.mxu0 %v3781_v42  ;;  %2083 = vmatprep.subr.bf16.mxu1 %v3900_v4 }
 0x1e4   :  { %2212 = vmatprep.subr.bf16.mxu0 %v3900_v4 }
 0x1e6   :  { %2084 = vmatpush1.bf16.msra.mxu1 %v3782_v43  ;;  %v3823_v43 = vld [vmem:[%s5042_s3 + $0x438] sm:$0xff]  }
 0x1e7   :  { %2213 = vmatpush1.bf16.msra.mxu0 %v3783_v44  ;;  %2085 = vmatprep.subr.bf16.mxu1 %v3900_v4 }
 0x1e8   :  { %2214 = vmatprep.subr.bf16.mxu0 %v3900_v4 }
 0x1ea   :  { %2086 = vmatpush1.bf16.msra.mxu1 %v3784_v45 }
 0x1eb   :  { %2215 = vmatpush1.bf16.msra.mxu0 %v3785_v46  ;;  %2087 = vmatprep.subr.bf16.mxu1 %v3900_v4  ;;  %v3824_v46 = vld [vmem:[%s5042_s3 + $0x368] sm:$0xff]  }
 0x1ec   :  { %2216 = vmatprep.subr.bf16.mxu0 %v3900_v4 }
 0x1ee   :  { %2088 = vmatpush1.bf16.msra.mxu1 %v3786_v47 }
 0x1ef   :  { %2217 = vmatpush1.bf16.msra.mxu0 %v3787_v48  ;;  %2095 = vmatprep.subr.bf16.mxu1 %v3900_v4 }
 0x1f0   :  { %2224 = vmatprep.subr.bf16.mxu0 %v3900_v4 }
 0x1f2   :  { %2096 = vmatpush2.bf16.msra.mxu1 %v2071_v51  ;;  %v3827_v51 = vld [vmem:[%s5042_s3 + $0x428] sm:$0xff]  }
 0x1f3   :  { %2225 = vmatpush2.bf16.msra.mxu0 %v2200_v52  ;;  %2097 = vmatprep.subr.bf16.mxu1 %v3900_v4  ;;  %v4845_v52 = vld [vmem:[#allocation2 + $0x18] sm:$0x44] }
 0x1f4   :  { %2226 = vmatprep.subr.bf16.mxu0 %v3900_v4 }
 0x1f5   :  { %v4694_v55 = vpop.f32.mrf.mxu1  ;;  %v4696_v56 = vpop.f32.mrf.mxu0 }
 0x1f6   :  { %2098 = vmatpush2.bf16.msra.mxu1 %v3790_v53  ;;  %v3493_v53 = vcombine.low %v4721_v6, %v4721_v6  ;;  %v3839_v6 = vld [vmem:[%s5042_s3 + $0x598] sm:$0xff]  }
 0x1f7   :  { %2227 = vmatpush2.bf16.msra.mxu0 %v3791_v54  ;;  %v811_v58 = vpop.f32.mrf.mxu1  ;;  %v994_v59 = vpop.f32.mrf.mxu0  ;;  %2099 = vmatprep.subr.bf16.mxu1 %v3900_v4  ;;  %v3830_v54 = vld [vmem:[%s5042_s3 + $0x4e8] sm:$0xff]  }
 0x1f8   :  { %2228 = vmatprep.subr.bf16.mxu0 %v3900_v4  ;;  %v3526_v58 = vcombine.high %v4845_v52, %v4845_v52  ;;  %v3477_v59 = vcombine.low %v4729_v9, %v4729_v9  ;;  %v3842_v9 = vld [vmem:[%s5042_s3 + $0x4c0] sm:$0xff]  }
 0x1f9   :  { %v812_v61 = vpop.f32.mrf.mxu1  ;;  %v995_v62 = vpop.f32.mrf.mxu0 }
 0x1fa   :  { %2100 = vmatpush2.bf16.msra.mxu1 %v3792_v57  ;;  %v4853_v57 = vld [vmem:[#allocation2 + $0x18] sm:$0x11]  ;;  %v2374_v61 = vrot.slane %v3493_v53, 2 }
 0x1fb   :  { %2229 = vmatpush2.bf16.msra.mxu0 %v3793_v60  ;;  %v813_v0 = vpop.f32.mrf.mxu1  ;;  %v996_v1 = vpop.f32.mrf.mxu0  ;;  %2101 = vmatprep.subr.bf16.mxu1 %v3900_v4  ;;  %v3832_v60 = vld [vmem:[%s5042_s3 + $0x5b0] sm:$0xff]   ;;  %v3510_v62 = vcombine.high %v4853_v57, %v4853_v57  ;;  %v2790_v53 = vld [vmem:[%s5044_s5 + $0x78] sm:$0xff] }
 0x1fc   :  { %2230 = vmatprep.subr.bf16.mxu0 %v3900_v4  ;;  %v3834_v0 = vld [vmem:[%s5042_s3 + $0x4e0] sm:$0xff]   ;;  %v3835_v1 = vld [vmem:[%s5042_s3 + $0x5a8] sm:$0xff]  }
 0x1fe   :  { %2102 = vmatpush2.bf16.msra.mxu1 %v3794_v63  ;;  %v2631_v63 = vrot.slane %v3526_v58, 2  ;;  %v2785_v58 = vld [vmem:[%s5044_s5 + $0x50] sm:$0xff] }
 0x1ff   :  { %2231 = vmatpush2.bf16.msra.mxu0 %v3795_v2  ;;  %2103 = vmatprep.subr.bf16.mxu1 %v3900_v4  ;;  %v3836_v2 = vld [vmem:[%s5042_s3 + $0x4d8] sm:$0xff]  }
 0x200   :  { %2232 = vmatprep.subr.bf16.mxu0 %v3900_v4 }
 0x202   :  { %2104 = vmatpush2.bf16.msra.mxu1 %v3796_v3  ;;  %v3837_v3 = vld [vmem:[%s5042_s3 + $0x5a0] sm:$0xff]  }
 0x203   :  { %2233 = vmatpush2.bf16.msra.mxu0 %v3797_v5  ;;  %2329 = vmatprep.subr.bf16.mxu1 %v3900_v4  ;;  %v3838_v5 = vld [vmem:[%s5042_s3 + $0x4d0] sm:$0xff]  }
 0x204   :  { %2458 = vmatprep.subr.bf16.mxu0 %v3900_v4 }
 0x205   :  { %2106 = vmatmul.mubr.bf16.vlgmr.msra.gmra.mxu1 %v3445_v13  ;;  %v3844_v13 = vld [vmem:[%s5042_s3 + $0x4b8] sm:$0xff]  }
 0x206   :  { %2235 = vmatmul.mubr.bf16.vlgmr.msra.gmra.mxu0 %v2118_v15  ;;  %2330 = vmatpush1.bf16.msra.mxu1 %v3800_v8  ;;  %v3841_v8 = vld [vmem:[%s5042_s3 + $0x590] sm:$0xff]  }
 0x207   :  { %3492 = vmatprep.mubr.msk.bf16.mxu1 %vm401_vm13, %v3478_v16  ;;  %2459 = vmatpush1.bf16.msra.mxu0 %v3802_v14  ;;  %v3845_v14 = vld [vmem:[%s5042_s3 + $0x580] sm:$0xff]   ;;  %v3846_v15 = vld [vmem:[%s5042_s3 + $0x4b0] sm:$0xff]   ;;  %v3847_v16 = vld [vmem:[%s5042_s3 + $0x578] sm:$0xff]  }
 0x208   :  { %3508 = vmatprep.mubr.msk.bf16.mxu0 %vm401_vm13, %v2375_v17  ;;  %2331 = vmatprep.subr.bf16.mxu1 %v3900_v4  ;;  %v3848_v17 = vld [vmem:[%s5042_s3 + $0x510] ss:$0 sps:$4 sm:$0x33]  }
 0x209   :  { %2460 = vmatprep.subr.bf16.mxu0 %v3900_v4 }
 0x20a   :  { %2332 = vmatpush1.bf16.msra.mxu1 %v3804_v18  ;;  %v3849_v18 = vld [vmem:[%s5042_s3 + $0x5d8] ss:$0 sps:$4 sm:$0x33]  }
 0x20b   :  { %2461 = vmatpush1.bf16.msra.mxu0 %v3805_v19  ;;  %2333 = vmatprep.subr.bf16.mxu1 %v3900_v4  ;;  %v2583_v19 = vsel %vm405_vm2, %v3848_v17, 0  ;;  %v2775_v17 = vld [vmem:[%s5044_s5] sm:$0xff] }
 0x20c   :  { %2462 = vmatprep.subr.bf16.mxu0 %v3900_v4 }
 0x20e   :  { %2334 = vmatpush1.bf16.msra.mxu1 %v3806_v20  ;;  %v2712_v20 = vsel %vm405_vm2, %v3849_v18, 0 }
 0x20f   :  { %2463 = vmatpush1.bf16.msra.mxu0 %v3807_v21  ;;  %2335 = vmatprep.subr.bf16.mxu1 %v3900_v4  ;;  %v3850_v21 = vld [vmem:[%s5042_s3 + $0x508] sm:$0xff]  }
 0x210   :  { %2464 = vmatprep.subr.bf16.mxu0 %v3900_v4 }
 0x212   :  { %2336 = vmatpush1.bf16.msra.mxu1 %v3808_v22  ;;  %v3851_v22 = vld [vmem:[%s5042_s3 + $0x5d0] sm:$0xff]  }
 0x213   :  { %2465 = vmatpush1.bf16.msra.mxu0 %v3809_v23  ;;  %2337 = vmatprep.subr.bf16.mxu1 %v3900_v4 }
 0x214   :  { %2466 = vmatprep.subr.bf16.mxu0 %v3900_v4 }
 0x216   :  { %2338 = vmatpush1.bf16.msra.mxu1 %v3810_v24 }
 0x217   :  { %2467 = vmatpush1.bf16.msra.mxu0 %v3811_v25  ;;  %2339 = vmatprep.subr.bf16.mxu1 %v3900_v4  ;;  %v3852_v25 = vld [vmem:[%s5042_s3 + $0x500] sm:$0xff]  }
 0x218   :  { %2468 = vmatprep.subr.bf16.mxu0 %v3900_v4 }
 0x21a   :  { %2340 = vmatpush1.bf16.msra.mxu1 %v3812_v26 }
 0x21b   :  { %2469 = vmatpush1.bf16.msra.mxu0 %v3813_v27  ;;  %2341 = vmatprep.subr.bf16.mxu1 %v3900_v4  ;;  %v3853_v27 = vld [vmem:[%s5042_s3 + $0x5c8] sm:$0xff]  }
 0x21c   :  { %2470 = vmatprep.subr.bf16.mxu0 %v3900_v4 }
 0x21e   :  { %2342 = vmatpush1.bf16.msra.mxu1 %v3814_v28 }
 0x21f   :  { %2471 = vmatpush1.bf16.msra.mxu0 %v3815_v29  ;;  %2343 = vmatprep.subr.bf16.mxu1 %v3900_v4 }
 0x220   :  { %2472 = vmatprep.subr.bf16.mxu0 %v3900_v4 }
 0x222   :  { %2344 = vmatpush1.bf16.msra.mxu1 %v3816_v30 }
 0x223   :  { %2473 = vmatpush1.bf16.msra.mxu0 %v3817_v31  ;;  %2351 = vmatprep.subr.bf16.mxu1 %v3900_v4  ;;  %v3854_v31 = vld [vmem:[%s5042_s3 + $0x4f8] sm:$0xff]  }
 0x224   :  { %2480 = vmatprep.subr.bf16.mxu0 %v3900_v4 }
 0x226   :  { %2352 = vmatpush2.bf16.msra.mxu1 %v2327_v34 }
 0x227   :  { %2481 = vmatpush2.bf16.msra.mxu0 %v2456_v35  ;;  %2353 = vmatprep.subr.bf16.mxu1 %v3900_v4  ;;  %v3856_v35 = vld [vmem:[%s5042_s3 + $0x4f0] sm:$0xff]  }
 0x228   :  { %2482 = vmatprep.subr.bf16.mxu0 %v3900_v4 }
 0x229   :  { %v4818_v38 = vpop.f32.mrf.mxu1  ;;  %v4820_v39 = vpop.f32.mrf.mxu0 }
 0x22a   :  { %2354 = vmatpush2.bf16.msra.mxu1 %v3820_v36  ;;  %v3857_v36 = vld [vmem:[%s5042_s3 + $0x5b8] sm:$0xff]  }
 0x22b   :  { %2483 = vmatpush2.bf16.msra.mxu0 %v3821_v37  ;;  %v1177_v41 = vpop.f32.mrf.mxu1  ;;  %v1360_v42 = vpop.f32.mrf.mxu0  ;;  %2355 = vmatprep.subr.bf16.mxu1 %v3900_v4  ;;  %v3525_v37 = vcombine.low %v4845_v52, %v4845_v52  ;;  %v3901_v52 = vmov 0.0  }
 0x22c   :  { %2484 = vmatprep.subr.bf16.mxu0 %v3900_v4 }
 0x22d   :  { %v1178_v44 = vpop.f32.mrf.mxu1  ;;  %v1361_v45 = vpop.f32.mrf.mxu0  ;;  %v2630_v41 = vrot.slane %v3525_v37, 2 }
 0x22e   :  { %2356 = vmatpush2.bf16.msra.mxu1 %v3822_v40  ;;  %v3509_v40 = vcombine.low %v4853_v57, %v4853_v57  ;;  %v2786_v57 = vld [vmem:[%s5044_s5 + $0x58] sm:$0xff] }
 0x22f   :  { %2485 = vmatpush2.bf16.msra.mxu0 %v3823_v43  ;;  %v1179_v47 = vpop.f32.mrf.mxu1  ;;  %v1362_v48 = vpop.f32.mrf.mxu0  ;;  %2357 = vmatprep.subr.bf16.mxu1 %v3900_v4 }
 0x230   :  { %2486 = vmatprep.subr.bf16.mxu0 %v3900_v4 }
 0x232   :  { %2358 = vmatpush2.bf16.msra.mxu1 %v3824_v46 }
 0x233   :  { %2487 = vmatpush2.bf16.msra.mxu0 %v3825_v49  ;;  %2359 = vmatprep.subr.bf16.mxu1 %v3900_v4 }
 0x234   :  { %2488 = vmatprep.subr.bf16.mxu0 %v3900_v4 }
 0x236   :  { %2360 = vmatpush2.bf16.msra.mxu1 %v3826_v50 }
 0x237   :  { %2489 = vmatpush2.bf16.msra.mxu0 %v3827_v51  ;;  %2585 = vmatprep.subr.bf16.mxu1 %v3900_v4 }
 0x238   :  { %2714 = vmatprep.subr.bf16.mxu0 %v3900_v4 }
 0x239   :  { %2362 = vmatmul.mubr.bf16.vlgmr.msra.gmra.mxu1 %v3477_v59  ;;  %v2784_v59 = vld [vmem:[%s5044_s5 + $0x48] sm:$0xff] }
 0x23a   :  { %2491 = vmatmul.mubr.bf16.vlgmr.msra.gmra.mxu0 %v2374_v61  ;;  %2586 = vmatpush1.bf16.msra.mxu1 %v3830_v54  ;;  %v2787_v54 = vld [vmem:[%s5044_s5 + $0x60] sm:$0xff]  ;;  %v2782_v61 = vld [vmem:[%s5044_s5 + $0x38] sm:$0xff] }
 0x23b   :  { %3524 = vmatprep.mubr.msk.bf16.mxu1 %vm401_vm13, %v3510_v62  ;;  %2715 = vmatpush1.bf16.msra.mxu0 %v3832_v60  ;;  %v2783_v60 = vld [vmem:[%s5044_s5 + $0x40] sm:$0xff]  ;;  %v2781_v62 = vld [vmem:[%s5044_s5 + $0x30] sm:$0xff] }
 0x23c   :  { %3540 = vmatprep.mubr.msk.bf16.mxu0 %vm401_vm13, %v2631_v63  ;;  %2587 = vmatprep.subr.bf16.mxu1 %v3900_v4  ;;  %v2780_v63 = vld [vmem:[%s5044_s5 + $0x28] sm:$0xff] }
 0x23d   :  { %2716 = vmatprep.subr.bf16.mxu0 %v3900_v4 }
 0x23e   :  { %2588 = vmatpush1.bf16.msra.mxu1 %v3834_v0 }
 0x23f   :  { %2717 = vmatpush1.bf16.msra.mxu0 %v3835_v1  ;;  %2589 = vmatprep.subr.bf16.mxu1 %v3900_v4  ;;  %v2779_v1 = vld [vmem:[%s5044_s5 + $0x20] sm:$0xff] }
 0x240   :  { %2718 = vmatprep.subr.bf16.mxu0 %v3900_v4 }
 0x242   :  { %2590 = vmatpush1.bf16.msra.mxu1 %v3836_v2 }
 0x243   :  { %2719 = vmatpush1.bf16.msra.mxu0 %v3837_v3  ;;  %2591 = vmatprep.subr.bf16.mxu1 %v3900_v4 }
 0x244   :  { %2720 = vmatprep.subr.bf16.mxu0 %v3900_v4 }
 0x246   :  { %2592 = vmatpush1.bf16.msra.mxu1 %v3838_v5 }
 0x247   :  { %2721 = vmatpush1.bf16.msra.mxu0 %v3839_v6  ;;  %2593 = vmatprep.subr.bf16.mxu1 %v3900_v4 }
 0x248   :  { %2722 = vmatprep.subr.bf16.mxu0 %v3900_v4 }
 0x24a   :  { %2594 = vmatpush1.bf16.msra.mxu1 %v3840_v7  ;;  %v2778_v7 = vld [vmem:[%s5044_s5 + $0x18] sm:$0xff] }
 0x24b   :  { %2723 = vmatpush1.bf16.msra.mxu0 %v3841_v8  ;;  %2595 = vmatprep.subr.bf16.mxu1 %v3900_v4 }
 0x24c   :  { %2724 = vmatprep.subr.bf16.mxu0 %v3900_v4 }
 0x24e   :  { %2596 = vmatpush1.bf16.msra.mxu1 %v3842_v9 }
 0x24f   :  { %2725 = vmatpush1.bf16.msra.mxu0 %v3843_v10  ;;  %2597 = vmatprep.subr.bf16.mxu1 %v3900_v4 }
 0x250   :  { %2726 = vmatprep.subr.bf16.mxu0 %v3900_v4 }
 0x252   :  { %2598 = vmatpush1.bf16.msra.mxu1 %v3844_v13  ;;  %v2777_v13 = vld [vmem:[%s5044_s5 + $0x10] sm:$0xff] }
 0x253   :  { %2727 = vmatpush1.bf16.msra.mxu0 %v3845_v14  ;;  %2599 = vmatprep.subr.bf16.mxu1 %v3900_v4 }
 0x254   :  { %2728 = vmatprep.subr.bf16.mxu0 %v3900_v4 }
 0x256   :  { %2600 = vmatpush1.bf16.msra.mxu1 %v3846_v15 }
 0x257   :  { %2729 = vmatpush1.bf16.msra.mxu0 %v3847_v16  ;;  %2607 = vmatprep.subr.bf16.mxu1 %v3900_v4 }
 0x258   :  { %2736 = vmatprep.subr.bf16.mxu0 %v3900_v4 }
 0x25a   :  { %2608 = vmatpush2.bf16.msra.mxu1 %v2583_v19 }
 0x25b   :  { %2737 = vmatpush2.bf16.msra.mxu0 %v2712_v20  ;;  %2609 = vmatprep.subr.bf16.mxu1 %v3900_v4 }
 0x25c   :  { %2738 = vmatprep.subr.bf16.mxu0 %v3900_v4 }
 0x25d   :  { %v4942_v23 = vpop.f32.mrf.mxu1 }
 0x25e   :  { %v4944_v24 = vpop.f32.mrf.mxu0  ;;  %2610 = vmatpush2.bf16.msra.mxu1 %v3850_v21 }
 0x25f   :  { %2739 = vmatpush2.bf16.msra.mxu0 %v3851_v22  ;;  %v1543_v26 = vpop.f32.mrf.mxu1  ;;  %2611 = vmatprep.subr.bf16.mxu1 %v3900_v4 }
 0x260   :  { %v1726_v28 = vpop.f32.mrf.mxu0  ;;  %2740 = vmatprep.subr.bf16.mxu0 %v3900_v4 }
 0x261   :  { %v1544_v29 = vpop.f32.mrf.mxu1 }
 0x262   :  { %v1727_v30 = vpop.f32.mrf.mxu0  ;;  %2612 = vmatpush2.bf16.msra.mxu1 %v3852_v25 }
 0x263   :  { %2741 = vmatpush2.bf16.msra.mxu0 %v3853_v27  ;;  %v1545_v32 = vpop.f32.mrf.mxu1  ;;  %2613 = vmatprep.subr.bf16.mxu1 %v3900_v4 }
 0x264   :  { %v1728_v34 = vpop.f32.mrf.mxu0  ;;  %2742 = vmatprep.subr.bf16.mxu0 %v3900_v4 }
 0x266   :  { %2614 = vmatpush2.bf16.msra.mxu1 %v3854_v31 }
 0x267   :  { %2743 = vmatpush2.bf16.msra.mxu0 %v3855_v33  ;;  %2615 = vmatprep.subr.bf16.mxu1 %v3900_v4 }
 0x268   :  { %2744 = vmatprep.subr.bf16.mxu0 %v3900_v4 }
 0x26a   :  { %2616 = vmatpush2.bf16.msra.mxu1 %v3856_v35 }
 0x26b   :  { %2745 = vmatpush2.bf16.msra.mxu0 %v3857_v36  ;;  %3565 = vmatprep.subr.mxu1 %v3901_v52 }
 0x26d   :  { %2618 = vmatmul.mubr.bf16.vlgmr.msra.gmra.mxu1 %v3509_v40 }
 0x26e   :  { %2747 = vmatmul.mubr.bf16.vlgmr.msra.gmra.mxu0 %v2630_v41  ;;  %3566 = vmatpush3.msra.mxu1 %v2790_v53 }
 0x26f   :  { %3567 = vmatprep.subr.mxu1 %v3901_v52  ;;  %3597 = vmatprep.mubr.msk.f32.mxu1 %vm3902_vm14, %v3901_v52 }
 0x291   :  { %v1851_v42 = vpop.f32.mrf.mxu1 }
 0x292   :  { %v1852_v43 = vadd.f32 %v1851_v42, %v4570_v11  ;;  %v1980_v44 = vpop.f32.mrf.mxu0  ;;  %v2789_v11 = vld [vmem:[%s5044_s5 + $0x70] sm:$0xff] }
 0x293   :  { %v1981_v45 = vadd.f32 %v1980_v44, %v4572_v12  ;;  %v1853_v46 = vpop.f32.mrf.mxu1  ;;  %3568 = vmatpush3.msra.mxu1 %v2789_v11  ;;  %v2788_v12 = vld [vmem:[%s5044_s5 + $0x68] sm:$0xff] }
 0x294   :  { %v1982_v47 = vpop.f32.mrf.mxu0  ;;  %3569 = vmatprep.subr.mxu1 %v3901_v52 }
 0x295   :  { %v2754_v4 = vadd.f32 %v1981_v45, %v1852_v43  ;;  %v1854_v48 = vpop.f32.mrf.mxu1  ;;  %3570 = vmatpush3.msra.mxu1 %v2788_v12 }
 0x296   :  { %v1983_v49 = vpop.f32.mrf.mxu0  ;;  %3571 = vmatprep.subr.mxu1 %v3901_v52  ;;  %v3543_v48 = vld [vmem:[%s5045_s6] ss:$0 sm:$0xff] }
 0x297   :  { %v1855_v50 = vpop.f32.mrf.mxu1  ;;  %3572 = vmatpush3.msra.mxu1 %v2787_v54 }
 0x298   :  { %v1984_v51 = vpop.f32.mrf.mxu0  ;;  %3573 = vmatprep.subr.mxu1 %v3901_v52 }
 0x299   :  { %3574 = vmatpush3.msra.mxu1 %v2786_v57 }
 0x29a   :  { %3575 = vmatprep.subr.mxu1 %v3901_v52 }
 0x29b   :  { %3576 = vmatpush3.msra.mxu1 %v2785_v58 }
 0x29c   :  { %3577 = vmatprep.subr.mxu1 %v3901_v52 }
 0x29d   :  { %3578 = vmatpush3.msra.mxu1 %v2784_v59 }
 0x29e   :  { %3579 = vmatprep.subr.mxu1 %v3901_v52 }
 0x29f   :  { %3580 = vmatpush3.msra.mxu1 %v2783_v60 }
 0x2a0   :  { %3581 = vmatprep.subr.mxu1 %v3901_v52 }
 0x2a1   :  { %3582 = vmatpush3.msra.mxu1 %v2782_v61 }
 0x2a2   :  { %3583 = vmatprep.subr.mxu1 %v3901_v52 }
 0x2a3   :  { %3584 = vmatpush3.msra.mxu1 %v2781_v62 }
 0x2a4   :  { %3585 = vmatprep.subr.mxu1 %v3901_v52 }
 0x2a5   :  { %3586 = vmatpush3.msra.mxu1 %v2780_v63 }
 0x2a6   :  { %3587 = vmatprep.subr.mxu1 %v3901_v52 }
 0x2a7   :  { %3588 = vmatpush3.msra.mxu1 %v2779_v1 }
 0x2a8   :  { %3589 = vmatprep.subr.mxu1 %v3901_v52 }
 0x2a9   :  { %3590 = vmatpush3.msra.mxu1 %v2778_v7 }
 0x2aa   :  { %3591 = vmatprep.subr.mxu1 %v3901_v52 }
 0x2ab   :  { %3592 = vmatpush3.msra.mxu1 %v2777_v13 }
 0x2ac   :  { %3593 = vmatprep.subr.mxu1 %v3901_v52 }
 0x2c5   :  { %v2107_v0 = vpop.f32.mrf.mxu1 }
 0x2c6   :  { %v2108_v2 = vadd.f32 %v2107_v0, %v4694_v55  ;;  %v2236_v3 = vpop.f32.mrf.mxu0 }
 0x2c7   :  { %v2237_v5 = vadd.f32 %v2236_v3, %v4696_v56  ;;  %v2109_v6 = vpop.f32.mrf.mxu1  ;;  %v2776_v56 = vld [vmem:[%s5044_s5 + $0x8] sm:$0xff] }
 0x2c8   :  { %v2238_v8 = vpop.f32.mrf.mxu0  ;;  %3594 = vmatpush3.msra.mxu1 %v2776_v56 }
 0x2c9   :  { %v2755_v9 = vadd.f32 %v2237_v5, %v2108_v2  ;;  %v2110_v10 = vpop.f32.mrf.mxu1  ;;  %3595 = vmatprep.subr.mxu1 %v3901_v52 }
 0x2ca   :  { %v2239_v55 = vpop.f32.mrf.mxu0  ;;  %3596 = vmatpush3.msra.mxu1 %v2775_v17 }
 0x2cb   :  { %v2758_v14 = vadd.f32 %v2755_v9, %v2754_v4  ;;  %v2111_v15 = vpop.f32.mrf.mxu1 }
 0x2cc   :  { %v2240_v16 = vpop.f32.mrf.mxu0 }
 0x2f9   :  { %v2363_v18 = vpop.f32.mrf.mxu1 }
 0x2fa   :  { %v2492_v19 = vpop.f32.mrf.mxu0  ;;  %v2364_v28 = vadd.f32 %v2363_v18, %v4818_v38  ;;  %v3541_v38 = vld [vmem:[%s5043_s4] ss:$0 sm:$0xff]  ;;  %s3878_s4 = scalar_lea.vmem %s2876_s14, 32 }
 0x2fb   :  { %v2365_v20 = vpop.f32.mrf.mxu1  ;;  %v2493_v29 = vadd.f32 %v2492_v19, %v4820_v39  ;;  %p3879_p0 = scmp.ne.s32.totalorder %s2876_s14, %s3878_s4  ;;  %p3884_p2 = scmp.lt.s32.totalorder %s3878_s4, %s3878_s4 }
 0x2fc   :  { %v2494_v21 = vpop.f32.mrf.mxu0 }
 0x2fd   :  { %v2366_v22 = vpop.f32.mrf.mxu1  ;;  %v2756_v36 = vadd.f32 %v2493_v29, %v2364_v28  ;;  %p3885_p3 = por %p3884_p2, %p3883_p1 }
 0x2fe   :  { %v2495_v25 = vpop.f32.mrf.mxu0 }
 0x2ff   :  { %v2367_v26 = vpop.f32.mrf.mxu1  ;;  %p3886_p4 = pnand %p3885_p3, %p3879_p0 }
 0x300   :  { %v2496_v27 = vpop.f32.mrf.mxu0 }
 0x32d   :  { %v2619_v30 = vpop.f32.mrf.mxu1 }
 0x32e   :  { %v2620_v31 = vadd.f32 %v2619_v30, %v4942_v23  ;;  %v2748_v32 = vpop.f32.mrf.mxu0 }
 0x32f   :  { %v2749_v33 = vadd.f32 %v2748_v32, %v4944_v24  ;;  %v2621_v34 = vpop.f32.mrf.mxu1 }
 0x330   :  { %v2750_v35 = vpop.f32.mrf.mxu0 }
 0x331   :  { %v2757_v37 = vadd.f32 %v2749_v33, %v2620_v31  ;;  %v2622_v40 = vpop.f32.mrf.mxu1 }
 0x332   :  { %v2751_v41 = vpop.f32.mrf.mxu0 }
 0x333   :  { %v2759_v42 = vadd.f32 %v2757_v37, %v2756_v36  ;;  %v2623_v43 = vpop.f32.mrf.mxu1 }
 0x334   :  { %v2752_v44 = vpop.f32.mrf.mxu0 }
 0x335   :  { %v2760_v39 = vadd.f32 %v2759_v42, %v2758_v14 }
 0x337   :  { %v2768_v45 = vadd.f32 %v3541_v38, %v2760_v39 }
 0x339   :  { %v2770_v46 = vmin.f32 %v2768_v45, 0.0  ;;  %vm2769_vm15 = vcmp.gt.f32.partialorder %v2768_v45, 0.0 }
 0x33b   :  { %v2771_v23 = vmul.f32 1.442695, %v2770_v46 }
 0x33d   :  { %3876 = vpow2.f32 %v2771_v23 }
 0x34a   :  { %v3877_v47 = vpop.eup %3876 }
 0x34b   :  { %v3542_v24 = vadd.f32 -1.0, %v3877_v47 }
 0x34d   :  { %v2774_v4 = vsel %vm2769_vm15, %v2768_v45, %v3542_v24 }
 0x34e   :  { %3598 = vmatmul.mubr.f32.vlgmr.msra.gmra.mxu1 %v2774_v4 }
 0x40e   :  { %v2864_v49 = vpop.f32.mrf.mxu1 }
 0x40f   :  { %v2865_v50 = vadd.f32 %v3543_v48, %v2864_v49 }
 0x410   :  { %v3599_v51 = vpop.f32.mrf.mxu1 }
 0x411   :  { %2868 = vst [vmem:[#allocation3] sm:$0x3] %v2865_v50 }
 0x412   :  { %3889 = shalt.err (!%p3886_p4)
}
 0x413   :  { %2878 = dma.vmem_to_hbm [thread:$0]  %s2876_s14, 32, %s5046_s7, [#allocation4]  }
 0x414   :  { %3898 = dma.done.wait [#allocation4], 32  }
 0x415   :  { %3899 = vsyncadd [#allocation4], 4294967264 }
 0x416   :  { %2882 = vsyncpa [#allocation4], 1 }

</bundles_post_ra>
